<compile_context>
chip_gen: v7x
topology: tpu7x:2x2x1
jax: 0.10.0
libtpu: 0.0.40
codegen_flags: <defaults>
</compile_context>

<pallas_src>
import jax
import jax.numpy as jnp
from jax import lax
from jax.experimental import pallas as pl
from jax.experimental.pallas import tpu as pltpu


def _round_up(x, m):
    return ((x + m - 1) // m) * m


# ---------------------------------------------------------------------------
# Fused kernel:
#   [nearest-2x upsample] or [GroupNorm + swish]  ->  zero-halo pad (VMEM scratch)
#   -> 3x3 conv as 9 accumulated MXU matmuls -> +bias -> [+residual | +1x1 nin(residual)]
# One batch element per grid step; whole (H, W, C) map resident in VMEM.
# ---------------------------------------------------------------------------
def _make_fused_kernel(*, TH, W, apply_gn, num_groups, eps, residual_mode,
                       upsample, compute_dtype):
    def kernel(*refs):
        pad_ref = refs[-1]          # VMEM scratch: (TH+2, WP, Cin), compute_dtype
        o_ref = refs[-2]            # (1, TH, W, Cout)
        ins = refs[:-2]

        idx = 0
        x_ref = ins[idx]; idx += 1
        if upsample:
            dw_ref = ins[idx]; idx += 1
        if apply_gn:
            m_ref, mtg_ref, beta_ref = ins[idx:idx + 3]; idx += 3
        w_ref, b_ref = ins[idx], ins[idx + 1]; idx += 2
        if residual_mode == "add":
            res_ref = ins[idx]; idx += 1
        elif residual_mode == "nin":
            res_ref, nin_w_ref, nin_b_ref = ins[idx:idx + 3]; idx += 3

        WP = pad_ref.shape[1]
        Cin = pad_ref.shape[2]
        Cout = o_ref.shape[-1]
        pdt = pad_ref.dtype

        # Halo-only zeroing (interior is fully overwritten below every grid step).
        pad_ref[0:1, :, :] = jnp.zeros((1, WP, Cin), pdt)
        pad_ref[TH + 1:TH + 2, :, :] = jnp.zeros((1, WP, Cin), pdt)
        pad_ref[:, 0:1, :] = jnp.zeros((TH + 2, 1, Cin), pdt)
        pad_ref[:, W + 1:W + 2, :] = jnp.zeros((TH + 2, 1, Cin), pdt)

        if upsample:
            # Fused nearest-2x: rows duplicated via doubled stores, columns duplicated via
            # a per-row matmul against the 0/1 duplication matrix (exact on the MXU).
            Hl = TH // 2
            xl = x_ref[0]                       # (Hl, Wl, Cin)
            dw = dw_ref[...]                    # (W, Wl)
            for r in range(Hl):
                d = jnp.dot(dw, xl[r], preferred_element_type=jnp.float32)
                d = d.reshape(1, W, Cin).astype(pdt)
                pad_ref[2 * r + 1:2 * r + 2, 1:W + 1, :] = d
                pad_ref[2 * r + 2:2 * r + 3, 1:W + 1, :] = d
        else:
            if apply_gn:
                xf = x_ref[0].astype(jnp.float32).reshape(TH * W, Cin)
                s = jnp.sum(xf, axis=0, keepdims=True)                    # (1, Cin)
                s2 = jnp.sum(xf * xf, axis=0, keepdims=True)
                cnt = float(TH * W * (Cin // num_groups))
                sg = jnp.dot(s, m_ref[...], preferred_element_type=jnp.float32)
                s2g = jnp.dot(s2, m_ref[...], preferred_element_type=jnp.float32)
                mean_g = sg / cnt
                var_g = jnp.maximum(s2g / cnt - mean_g * mean_g, 0.0)     # clamp >= 0
                inv_g = lax.rsqrt(var_g + eps)
                # Folded affine: a = inv*gamma (gamma baked into MTg), b = beta - mean*a
                a_c = jnp.dot(inv_g, mtg_ref[...], preferred_element_type=jnp.float32)
                b_c = beta_ref[...] - jnp.dot(mean_g * inv_g, mtg_ref[...],
                                              preferred_element_type=jnp.float32)
                y = (xf * a_c + b_c).astype(compute_dtype)
                act = (y * jax.nn.sigmoid(y)).reshape(TH, W, Cin)         # swish
            else:
                act = x_ref[0]                  # no whole-map f32 upcast for non-GN layers
            pad_ref[1:TH + 1, 1:W + 1, :] = act.astype(pdt)

        # 3x3 conv: 9 accumulated MXU matmuls over shifted windows (no im2col slab).
        acc = jnp.zeros((TH * W, Cout), jnp.float32)
        for t in range(9):
            dy, dx = t // 3, t % 3
            win = pad_ref[dy:dy + TH, dx:dx + W, :].reshape(TH * W, Cin)
            acc = acc + jnp.dot(win, w_ref[t], preferred_element_type=jnp.float32)
        acc = acc + b_ref[...]

        if residual_mode == "add":
            acc = acc + res_ref[0].reshape(TH * W, Cout).astype(jnp.float32)
        elif residual_mode == "nin":
            res = res_ref[0]
            cres = res.shape[-1]
            acc = acc + jnp.dot(res.reshape(TH * W, cres), nin_w_ref[...],
                                preferred_element_type=jnp.float32) + nin_b_ref[...]

        o_ref[...] = acc.reshape(1, TH, W, Cout).astype(o_ref.dtype)

    return kernel


def fused_conv3x3(x, conv, *, gn=None, residual=None, nin=None, upsample=False,
                  num_groups=32, eps=1e-6):
    """Fused [nearest-2x | GN+swish] -> conv3x3(pad=1) -> [+residual | +nin(residual)].

    x    : (N, Hin, Win, Cin), compute dtype
    conv : {"w": (9, Cin, Cout) compute dtype, "b": (1, Cout) f32}  (pre-packed)
    gn   : {"M": (Cin, G) f32, "MTg": (G, Cin) f32 (gamma folded), "beta": (1, Cin) f32}
    """
    N, Hin, Win, Cin = x.shape
    compute_dtype = conv["w"].dtype
    Cout = conv["w"].shape[-1]
    TH, W = (2 * Hin, 2 * Win) if upsample else (Hin, Win)
    WP = _round_up(W + 2, 8)
    apply_gn = gn is not None
    residual_mode = "none" if residual is None else ("nin" if nin is not None else "add")
    assert not (upsample and (apply_gn or residual is not None))
    if apply_gn:
        G = gn["M"].shape[-1]
        assert Cin % G == 0 and gn["M"].shape == (Cin, G)
    if residual_mode == "add":
        assert residual.shape[-1] == Cout

    args = [x]
    in_specs = [pl.BlockSpec((1, Hin, Win, Cin), lambda n: (n, 0, 0, 0))]
    if upsample:
        dup = (jnp.arange(W)[:, None] // 2 == jnp.arange(Win)[None, :]).astype(compute_dtype)
        args.append(dup)
        in_specs.append(pl.BlockSpec((W, Win), lambda n: (0, 0)))
    if apply_gn:
        args += [gn["M"], gn["MTg"], gn["beta"]]
        in_specs += [pl.BlockSpec((Cin, G), lambda n: (0, 0)),
                     pl.BlockSpec((G, Cin), lambda n: (0, 0)),
                     pl.BlockSpec((1, Cin), lambda n: (0, 0))]
    args += [conv["w"], conv["b"]]
    in_specs += [pl.BlockSpec((9, Cin, Cout), lambda n: (0, 0, 0)),
                 pl.BlockSpec((1, Cout), lambda n: (0, 0))]
    cres = 0
    if residual_mode != "none":
        cres = residual.shape[-1]
        args.append(residual)
        in_specs.append(pl.BlockSpec((1, TH, W, cres), lambda n: (n, 0, 0, 0)))
        if residual_mode == "nin":
            args += [nin["w"], nin["b"]]
            in_specs += [pl.BlockSpec((cres, Cout), lambda n: (0, 0)),
                         pl.BlockSpec((1, Cout), lambda n: (0, 0))]

    # Explicit VMEM budget (review): 2x double-buffered blocks + scratch + f32 temporaries.
    # TODO(synk): replace the whole-map block with H-tiling when this exceeds the chip budget.
    esz = jnp.dtype(compute_dtype).itemsize
    blk = (Hin * Win * Cin + TH * W * Cout + TH * W * cres) * esz
    const = 9 * Cin * Cout * esz + Cout * 4
    if apply_gn:
        const += 2 * Cin * G * 4 + Cin * 4
    if residual_mode == "nin":
        const += cres * Cout * esz + Cout * 4
    if upsample:
        const += W * Win * esz
    scratch = (TH + 2) * WP * Cin * esz
    tmp = TH * W * Cout * 4 + TH * W * Cin * esz + (TH * W * Cin * 4 if apply_gn else 0)
    vmem_limit = int(min(128 * 1024 * 1024,
                         max(32 * 1024 * 1024, 2 * (blk + const) + scratch + 2 * tmp)))

    kernel = _make_fused_kernel(TH=TH, W=W, apply_gn=apply_gn, num_groups=num_groups,
                                eps=eps, residual_mode=residual_mode, upsample=upsample,
                                compute_dtype=compute_dtype)
    return pl.pallas_call(
        kernel,
        out_shape=jax.ShapeDtypeStruct((N, TH, W, Cout), compute_dtype),
        grid=(N,),
        in_specs=in_specs,
        out_specs=pl.BlockSpec((1, TH, W, Cout), lambda n: (n, 0, 0, 0)),
        scratch_shapes=[pltpu.VMEM((TH + 2, WP, Cin), compute_dtype)],
        compiler_params=pltpu.CompilerParams(
            dimension_semantics=("parallel",),
            vmem_limit_bytes=vmem_limit),
    )(*args)


# ---------------------------------------------------------------------------
# Module-level composition (all NHWC + bf16 internally).
# ---------------------------------------------------------------------------
def resnet_block(x, p, *, num_groups=32, eps=1e-6):
    """ResnetBlock with temb=None (decoder uses temb_channels=0): two fused pallas_calls."""
    h = fused_conv3x3(x, p["conv1"], gn=p["norm1"], num_groups=num_groups, eps=eps)
    # TODO(synk): dropout is identity (eval mode); training-mode masking not implemented.
    return fused_conv3x3(h, p["conv2"], gn=p["norm2"], residual=x, nin=p.get("nin"),
                         num_groups=num_groups, eps=eps)


def deconv_decoder_forward(packed, z_nchw, *, num_groups=32, eps=1e-6):
    """DeConvDecoder.forward: NCHW in/out; NHWC + compute dtype internally."""
    compute_dtype = packed["conv_in"]["w"].dtype
    h = jnp.transpose(z_nchw, (0, 2, 3, 1)).astype(compute_dtype)        # NCHW -> NHWC
    h = fused_conv3x3(h, packed["conv_in"], num_groups=num_groups, eps=eps)
    for i_level in reversed(range(len(packed["up"]))):
        lvl = packed["up"][i_level]
        for bp in lvl["block"]:
            h = resnet_block(h, bp, num_groups=num_groups, eps=eps)
        if i_level != 0:
            # nearest-2x fused into the upsample conv (no 4x HBM round trip)
            h = fused_conv3x3(h, lvl["upsample"], upsample=True,
                              num_groups=num_groups, eps=eps)
    # norm_out + swish fused into conv_out; conv_out Cout padded to 128 (lane-dense store)
    h = fused_conv3x3(h, packed["conv_out"], gn=packed["norm_out"],
                      num_groups=num_groups, eps=eps)
    h = h[..., :packed["out_ch"]].astype(z_nchw.dtype)
    return jnp.transpose(h, (0, 3, 1, 2))                                # NHWC -> NCHW


# ---------------------------------------------------------------------------
# Parameter packing (done once, outside the forward pass).
# ---------------------------------------------------------------------------
def pack_decoder_params(raw, *, out_ch, num_groups=32, compute_dtype=jnp.bfloat16):
    f32 = jnp.float32

    def conv(w, b, pad_to=None):
        kh, kw, cin, cout = w.shape
        wp, bp = w.reshape(kh * kw, cin, cout), b
        if pad_to is not None:
            pc = _round_up(cout, pad_to)
            if pc != cout:
                wp = jnp.pad(wp, ((0, 0), (0, 0), (0, pc - cout)))
                bp = jnp.pad(bp, (0, pc - cout))
        return {"w": wp.astype(compute_dtype), "b": bp.reshape(1, -1).astype(f32)}

    def gnorm(gamma, beta):
        c = gamma.shape[0]
        assert c % num_groups == 0
        m = (jnp.arange(c)[:, None] // (c // num_groups)
             == jnp.arange(num_groups)[None, :]).astype(f32)
        return {"M": m, "MTg": m.T * gamma.reshape(1, c).astype(f32),
                "beta": beta.reshape(1, c).astype(f32)}

    packed = {"out_ch": out_ch,
              "conv_in": conv(raw["conv_in"]["w"], raw["conv_in"]["b"]),
              "up": []}
    for lvl in raw["up"]:
        blocks = []
        for bp in lvl["block"]:
            q = {"norm1": gnorm(bp["norm1_gamma"], bp["norm1_beta"]),
                 "conv1": conv(bp["conv1_w"], bp["conv1_b"]),
                 "norm2": gnorm(bp["norm2_gamma"], bp["norm2_beta"]),
                 "conv2": conv(bp["conv2_w"], bp["conv2_b"])}
            if "nin_w" in bp:
                q["nin"] = {"w": bp["nin_w"].astype(compute_dtype),
                            "b": bp["nin_b"].reshape(1, -1).astype(f32)}
            blocks.append(q)
        plvl = {"block": blocks}
        if "upsample" in lvl:
            plvl["upsample"] = conv(lvl["upsample"]["w"], lvl["upsample"]["b"])
        packed["up"].append(plvl)
    packed["norm_out"] = gnorm(raw["norm_out"]["gamma"], raw["norm_out"]["beta"])
    packed["conv_out"] = conv(raw["conv_out"]["w"], raw["conv_out"]["b"], pad_to=128)
    return packed


# ---------------------------------------------------------------------------
# Raw parameter construction (HWIO conv weights, (Cin, Cout) nin weights).
# ---------------------------------------------------------------------------
def init_decoder_params(key, *, z_channels, num_resos, num_res_blocks, ch, out_ch, ch_mult):
    keys = iter(jax.random.split(key, 256))
    f32 = jnp.float32

    def nk():
        return next(keys)

    def conv_p(cin, cout):
        return {"w": 0.1 * jax.random.normal(nk(), (3, 3, cin, cout), f32),
                "b": 0.05 * jax.random.normal(nk(), (cout,), f32)}

    def gn_p(c):
        return {"gamma": 1.0 + 0.1 * jax.random.normal(nk(), (c,), f32),
                "beta": 0.1 * jax.random.normal(nk(), (c,), f32)}

    def resblock_p(cin, cout):
        n1, c1 = gn_p(cin), conv_p(cin, cout)
        n2, c2 = gn_p(cout), conv_p(cout, cout)
        p = {"norm1_gamma": n1["gamma"], "norm1_beta": n1["beta"],
             "conv1_w": c1["w"], "conv1_b": c1["b"],
             "norm2_gamma": n2["gamma"], "norm2_beta": n2["beta"],
             "conv2_w": c2["w"], "conv2_b": c2["b"]}
        if cin != cout:
            p["nin_w"] = 0.1 * jax.random.normal(nk(), (cin, cout), f32)
            p["nin_b"] = 0.05 * jax.random.normal(nk(), (cout,), f32)
        return p

    block_in = ch * ch_mult[num_resos - 1]
    params = {"conv_in": conv_p(z_channels, block_in), "up": [None] * num_resos}
    for i_level in reversed(range(num_resos)):
        block_out = ch * ch_mult[i_level]
        blocks = []
        for _ in range(num_res_blocks + 1):
            blocks.append(resblock_p(block_in, block_out))
            block_in = block_out
        lvl = {"block": blocks}
        if i_level != 0:
            lvl["upsample"] = conv_p(block_in, block_in)
        params["up"][i_level] = lvl
    params["norm_out"] = gn_p(block_in)
    params["conv_out"] = conv_p(block_in, out_ch)
    return params


# ---------------------------------------------------------------------------
# Pure-JAX (f32, lax.conv) reference — correctness check only.
# ---------------------------------------------------------------------------
def nearest_upsample_2x(x_nhwc):
    N, H, W, C = x_nhwc.shape
    x = x_nhwc[:, :, None, :, None, :]
    x = jnp.broadcast_to(x, (N, H, 2, W, 2, C))
    return x.reshape(N, 2 * H, 2 * W, C)


def reference_forward(params, z_nchw, *, num_groups=32, eps=1e-6):
    def gn(x, gamma, beta):
        N, H, W, C = x.shape
        G, Cg = num_groups, C // num_groups
        xg = x.reshape(N, H * W, G, Cg)
        mean = xg.mean(axis=(1, 3), keepdims=True)
        var = xg.var(axis=(1, 3), keepdims=True)
        xn = ((xg - mean) / jnp.sqrt(var + eps)).reshape(N, H, W, C)
        return xn * gamma.reshape(1, 1, 1, C) + beta.reshape(1, 1, 1, C)

    def swish(v):
        return v * jax.nn.sigmoid(v)

    def conv3(x, w, b):
        y = lax.conv_general_dilated(x, w, (1, 1), "SAME",
                                     dimension_numbers=("NHWC", "HWIO", "NHWC"),
                                     preferred_element_type=jnp.float32)
        return y + b.reshape(1, 1, 1, -1)

    def resblock(x, p):
        cin, cout = x.shape[-1], p["conv1_w"].shape[-1]
        h = conv3(swish(gn(x, p["norm1_gamma"], p["norm1_beta"])), p["conv1_w"], p["conv1_b"])
        h = conv3(swish(gn(h, p["norm2_gamma"], p["norm2_beta"])), p["conv2_w"], p["conv2_b"])
        if cin != cout:
            x = jnp.einsum("nhwc,cd->nhwd", x, p["nin_w"]) + p["nin_b"]
        return x + h

    h = conv3(jnp.transpose(z_nchw, (0, 2, 3, 1)), params["conv_in"]["w"], params["conv_in"]["b"])
    for i_level in reversed(range(len(params["up"]))):
        lvl = params["up"][i_level]
        for bp in lvl["block"]:
            h = resblock(h, bp)
        if i_level != 0:
            h = nearest_upsample_2x(h)
            h = conv3(h, lvl["upsample"]["w"], lvl["upsample"]["b"])
    h = conv3(swish(gn(h, params["norm_out"]["gamma"], params["norm_out"]["beta"])),
              params["conv_out"]["w"], params["conv_out"]["b"])
    return jnp.transpose(h, (0, 3, 1, 2))


if __name__ == "__main__":
    key = jax.random.PRNGKey(0)
    kp, kz = jax.random.split(key)

    cfg = dict(z_channels=32, num_resos=2, num_res_blocks=1, ch=32, out_ch=3, ch_mult=(1, 2))
    resolution = 16
    N = 2
    curr_res = resolution // 2 ** (cfg["num_resos"] - 1)   # 8x8 latent

    raw = init_decoder_params(kp, **cfg)
    z = jax.random.normal(kz, (N, cfg["z_channels"], curr_res, curr_res), jnp.float32)

    packed_bf16 = pack_decoder_params(raw, out_ch=cfg["out_ch"], compute_dtype=jnp.bfloat16)
    packed_f32 = pack_decoder_params(raw, out_ch=cfg["out_ch"], compute_dtype=jnp.float32)

    # perf path: bf16 activations + MXU operands, f32 accumulation
    out_bf16 = jax.block_until_ready(deconv_decoder_forward(packed_bf16, z))
    # reference-precision path through the same fused kernels
    out_f32 = jax.block_until_ready(deconv_decoder_forward(packed_f32, z))
    ref = reference_forward(raw, z)

    assert out_bf16.shape == (N, cfg["out_ch"], resolution, resolution), out_bf16.shape
    assert out_f32.shape == out_bf16.shape

    err_f32 = float(jnp.max(jnp.abs(out_f32 - ref)))
    assert err_f32 < 2e-3, f"f32 kernel vs reference: max abs err = {err_f32}"

    scale = max(1.0, float(jnp.max(jnp.abs(ref))))
    err_bf16 = float(jnp.max(jnp.abs(out_bf16 - ref)))
    assert err_bf16 < 1.5e-1 * scale, (
        f"bf16 kernel vs f32 reference: max abs err = {err_bf16} (scale {scale})")

    print("KERNEL_OK")
</pallas_src>

<mosaic_0001>
module attributes {stable_mosaic.version = 11 : i64} {
  func.func @kernel(%arg0: i32, %arg1: memref<1x8x8x32xbf16, #tpu.memory_space<vmem>>, %arg2: memref<9x32x64xbf16, #tpu.memory_space<vmem>>, %arg3: memref<1x64xf32, #tpu.memory_space<vmem>>, %arg4: memref<1x8x8x64xbf16, #tpu.memory_space<vmem>>, %arg5: memref<10x16x32xbf16, #tpu.memory_space<vmem>>) attributes {dimension_semantics = [#tpu.dimension_semantics<parallel>], iteration_bounds = array<i64: 2>, scalar_prefetch = 0 : i64, scratch_operands = 1 : i64, tpu.core_type = #tpu.core_type<tc>, window_params = [{transform_indices = @transform_0, window_bounds = array<i64: 1, 8, 8, 32>}, {pipeline_mode = #tpu.pipeline_mode<synchronous>, transform_indices = @transform_1, window_bounds = array<i64: 9, 32, 64>}, {pipeline_mode = #tpu.pipeline_mode<synchronous>, transform_indices = @transform_2, window_bounds = array<i64: 1, 64>}, {transform_indices = @transform_3, window_bounds = array<i64: 1, 8, 8, 64>}]} {
    %cst = arith.constant 0.000000e+00 : bf16
    %0 = vector.broadcast %cst : bf16 to vector<1x16x32xbf16>
    %c0 = arith.constant 0 : index
    %c0_0 = arith.constant 0 : index
    %c0_1 = arith.constant 0 : index
    %1 = vector.load %arg5[%c0, %c0_0, %c0_1] : memref<10x16x32xbf16, #tpu.memory_space<vmem>>, vector<1x16x32xbf16>
    tpu.vector_store %arg5[%c0, %c0_0, %c0_1], %0 {strides = array<i32>} : memref<10x16x32xbf16, #tpu.memory_space<vmem>>, vector<1x16x32xbf16>,
    %cst_2 = arith.constant 0.000000e+00 : bf16
    %2 = vector.broadcast %cst_2 : bf16 to vector<1x16x32xbf16>
    %c9 = arith.constant 9 : index
    %c0_3 = arith.constant 0 : index
    %c0_4 = arith.constant 0 : index
    %3 = vector.load %arg5[%c9, %c0_3, %c0_4] : memref<10x16x32xbf16, #tpu.memory_space<vmem>>, vector<1x16x32xbf16>
    tpu.vector_store %arg5[%c9, %c0_3, %c0_4], %2 {strides = array<i32>} : memref<10x16x32xbf16, #tpu.memory_space<vmem>>, vector<1x16x32xbf16>,
    %cst_5 = arith.constant 0.000000e+00 : bf16
    %4 = vector.broadcast %cst_5 : bf16 to vector<10x1x32xbf16>
    %c0_6 = arith.constant 0 : index
    %c0_7 = arith.constant 0 : index
    %c0_8 = arith.constant 0 : index
    %5 = vector.load %arg5[%c0_6, %c0_7, %c0_8] : memref<10x16x32xbf16, #tpu.memory_space<vmem>>, vector<10x1x32xbf16>
    tpu.vector_store %arg5[%c0_6, %c0_7, %c0_8], %4 {strides = array<i32>} : memref<10x16x32xbf16, #tpu.memory_space<vmem>>, vector<10x1x32xbf16>,
    %cst_9 = arith.constant 0.000000e+00 : bf16
    %6 = vector.broadcast %cst_9 : bf16 to vector<10x1x32xbf16>
    %c0_10 = arith.constant 0 : index
    %c9_11 = arith.constant 9 : index
    %c0_12 = arith.constant 0 : index
    %7 = vector.load %arg5[%c0_10, %c9_11, %c0_12] : memref<10x16x32xbf16, #tpu.memory_space<vmem>>, vector<10x1x32xbf16>
    tpu.vector_store %arg5[%c0_10, %c9_11, %c0_12], %6 {strides = array<i32>} : memref<10x16x32xbf16, #tpu.memory_space<vmem>>, vector<10x1x32xbf16>,
    %c0_13 = arith.constant 0 : index
    %c0_14 = arith.constant 0 : index
    %c0_15 = arith.constant 0 : index
    %c0_16 = arith.constant 0 : index
    %8 = vector.load %arg1[%c0_13, %c0_14, %c0_15, %c0_16] : memref<1x8x8x32xbf16, #tpu.memory_space<vmem>>, vector<1x8x8x32xbf16>
    %9 = vector.shape_cast %8 : vector<1x8x8x32xbf16> to vector<8x8x32xbf16>
    %c1 = arith.constant 1 : index
    %c1_17 = arith.constant 1 : index
    %c0_18 = arith.constant 0 : index
    %10 = vector.load %arg5[%c1, %c1_17, %c0_18] : memref<10x16x32xbf16, #tpu.memory_space<vmem>>, vector<8x8x32xbf16>
    tpu.vector_store %arg5[%c1, %c1_17, %c0_18], %9 {strides = array<i32>} : memref<10x16x32xbf16, #tpu.memory_space<vmem>>, vector<8x8x32xbf16>,
    %cst_19 = arith.constant 0.000000e+00 : f32
    %11 = vector.broadcast %cst_19 : f32 to vector<64x64xf32>
    %c0_20 = arith.constant 0 : index
    %c0_21 = arith.constant 0 : index
    %c0_22 = arith.constant 0 : index
    %12 = vector.load %arg5[%c0_20, %c0_21, %c0_22] : memref<10x16x32xbf16, #tpu.memory_space<vmem>>, vector<8x8x32xbf16>
    %13 = vector.shape_cast %12 : vector<8x8x32xbf16> to vector<64x32xbf16>
    %c0_23 = arith.constant 0 : index
    %c0_24 = arith.constant 0 : index
    %c0_25 = arith.constant 0 : index
    %14 = vector.load %arg2[%c0_23, %c0_24, %c0_25] : memref<9x32x64xbf16, #tpu.memory_space<vmem>>, vector<1x32x64xbf16>
    %15 = vector.shape_cast %14 : vector<1x32x64xbf16> to vector<32x64xbf16>
    %cst_26 = arith.constant dense<0.000000e+00> : vector<64x64xf32>
    %16 = tpu.matmul %13, %15, %cst_26 {dimension_numbers = #tpu.dot_dimension_numbers<[1], [0], [0], [1], [0, 0, 1, 1], [], []>} : vector<64x32xbf16>, vector<32x64xbf16>, vector<64x64xf32> -> vector<64x64xf32>
    %17 = arith.addf %11, %16 : vector<64x64xf32>
    %c0_27 = arith.constant 0 : index
    %c1_28 = arith.constant 1 : index
    %c0_29 = arith.constant 0 : index
    %18 = vector.load %arg5[%c0_27, %c1_28, %c0_29] : memref<10x16x32xbf16, #tpu.memory_space<vmem>>, vector<8x8x32xbf16>
    %19 = vector.shape_cast %18 : vector<8x8x32xbf16> to vector<64x32xbf16>
    %c1_30 = arith.constant 1 : index
    %c0_31 = arith.constant 0 : index
    %c0_32 = arith.constant 0 : index
    %20 = vector.load %arg2[%c1_30, %c0_31, %c0_32] : memref<9x32x64xbf16, #tpu.memory_space<vmem>>, vector<1x32x64xbf16>
    %21 = vector.shape_cast %20 : vector<1x32x64xbf16> to vector<32x64xbf16>
    %cst_33 = arith.constant dense<0.000000e+00> : vector<64x64xf32>
    %22 = tpu.matmul %19, %21, %cst_33 {dimension_numbers = #tpu.dot_dimension_numbers<[1], [0], [0], [1], [0, 0, 1, 1], [], []>} : vector<64x32xbf16>, vector<32x64xbf16>, vector<64x64xf32> -> vector<64x64xf32>
    %23 = arith.addf %17, %22 : vector<64x64xf32>
    %c0_34 = arith.constant 0 : index
    %c2 = arith.constant 2 : index
    %c0_35 = arith.constant 0 : index
    %24 = vector.load %arg5[%c0_34, %c2, %c0_35] : memref<10x16x32xbf16, #tpu.memory_space<vmem>>, vector<8x8x32xbf16>
    %25 = vector.shape_cast %24 : vector<8x8x32xbf16> to vector<64x32xbf16>
    %c2_36 = arith.constant 2 : index
    %c0_37 = arith.constant 0 : index
    %c0_38 = arith.constant 0 : index
    %26 = vector.load %arg2[%c2_36, %c0_37, %c0_38] : memref<9x32x64xbf16, #tpu.memory_space<vmem>>, vector<1x32x64xbf16>
    %27 = vector.shape_cast %26 : vector<1x32x64xbf16> to vector<32x64xbf16>
    %cst_39 = arith.constant dense<0.000000e+00> : vector<64x64xf32>
    %28 = tpu.matmul %25, %27, %cst_39 {dimension_numbers = #tpu.dot_dimension_numbers<[1], [0], [0], [1], [0, 0, 1, 1], [], []>} : vector<64x32xbf16>, vector<32x64xbf16>, vector<64x64xf32> -> vector<64x64xf32>
    %29 = arith.addf %23, %28 : vector<64x64xf32>
    %c1_40 = arith.constant 1 : index
    %c0_41 = arith.constant 0 : index
    %c0_42 = arith.constant 0 : index
    %30 = vector.load %arg5[%c1_40, %c0_41, %c0_42] : memref<10x16x32xbf16, #tpu.memory_space<vmem>>, vector<8x8x32xbf16>
    %31 = vector.shape_cast %30 : vector<8x8x32xbf16> to vector<64x32xbf16>
    %c3 = arith.constant 3 : index
    %c0_43 = arith.constant 0 : index
    %c0_44 = arith.constant 0 : index
    %32 = vector.load %arg2[%c3, %c0_43, %c0_44] : memref<9x32x64xbf16, #tpu.memory_space<vmem>>, vector<1x32x64xbf16>
    %33 = vector.shape_cast %32 : vector<1x32x64xbf16> to vector<32x64xbf16>
    %cst_45 = arith.constant dense<0.000000e+00> : vector<64x64xf32>
    %34 = tpu.matmul %31, %33, %cst_45 {dimension_numbers = #tpu.dot_dimension_numbers<[1], [0], [0], [1], [0, 0, 1, 1], [], []>} : vector<64x32xbf16>, vector<32x64xbf16>, vector<64x64xf32> -> vector<64x64xf32>
    %35 = arith.addf %29, %34 : vector<64x64xf32>
    %c1_46 = arith.constant 1 : index
    %c1_47 = arith.constant 1 : index
    %c0_48 = arith.constant 0 : index
    %36 = vector.load %arg5[%c1_46, %c1_47, %c0_48] : memref<10x16x32xbf16, #tpu.memory_space<vmem>>, vector<8x8x32xbf16>
    %37 = vector.shape_cast %36 : vector<8x8x32xbf16> to vector<64x32xbf16>
    %c4 = arith.constant 4 : index
    %c0_49 = arith.constant 0 : index
    %c0_50 = arith.constant 0 : index
    %38 = vector.load %arg2[%c4, %c0_49, %c0_50] : memref<9x32x64xbf16, #tpu.memory_space<vmem>>, vector<1x32x64xbf16>
    %39 = vector.shape_cast %38 : vector<1x32x64xbf16> to vector<32x64xbf16>
    %cst_51 = arith.constant dense<0.000000e+00> : vector<64x64xf32>
    %40 = tpu.matmul %37, %39, %cst_51 {dimension_numbers = #tpu.dot_dimension_numbers<[1], [0], [0], [1], [0, 0, 1, 1], [], []>} : vector<64x32xbf16>, vector<32x64xbf16>, vector<64x64xf32> -> vector<64x64xf32>
    %41 = arith.addf %35, %40 : vector<64x64xf32>
    %c1_52 = arith.constant 1 : index
    %c2_53 = arith.constant 2 : index
    %c0_54 = arith.constant 0 : index
    %42 = vector.load %arg5[%c1_52, %c2_53, %c0_54] : memref<10x16x32xbf16, #tpu.memory_space<vmem>>, vector<8x8x32xbf16>
    %43 = vector.shape_cast %42 : vector<8x8x32xbf16> to vector<64x32xbf16>
    %c5 = arith.constant 5 : index
    %c0_55 = arith.constant 0 : index
    %c0_56 = arith.constant 0 : index
    %44 = vector.load %arg2[%c5, %c0_55, %c0_56] : memref<9x32x64xbf16, #tpu.memory_space<vmem>>, vector<1x32x64xbf16>
    %45 = vector.shape_cast %44 : vector<1x32x64xbf16> to vector<32x64xbf16>
    %cst_57 = arith.constant dense<0.000000e+00> : vector<64x64xf32>
    %46 = tpu.matmul %43, %45, %cst_57 {dimension_numbers = #tpu.dot_dimension_numbers<[1], [0], [0], [1], [0, 0, 1, 1], [], []>} : vector<64x32xbf16>, vector<32x64xbf16>, vector<64x64xf32> -> vector<64x64xf32>
    %47 = arith.addf %41, %46 : vector<64x64xf32>
    %c2_58 = arith.constant 2 : index
    %c0_59 = arith.constant 0 : index
    %c0_60 = arith.constant 0 : index
    %48 = vector.load %arg5[%c2_58, %c0_59, %c0_60] : memref<10x16x32xbf16, #tpu.memory_space<vmem>>, vector<8x8x32xbf16>
    %49 = vector.shape_cast %48 : vector<8x8x32xbf16> to vector<64x32xbf16>
    %c6 = arith.constant 6 : index
    %c0_61 = arith.constant 0 : index
    %c0_62 = arith.constant 0 : index
    %50 = vector.load %arg2[%c6, %c0_61, %c0_62] : memref<9x32x64xbf16, #tpu.memory_space<vmem>>, vector<1x32x64xbf16>
    %51 = vector.shape_cast %50 : vector<1x32x64xbf16> to vector<32x64xbf16>
    %cst_63 = arith.constant dense<0.000000e+00> : vector<64x64xf32>
    %52 = tpu.matmul %49, %51, %cst_63 {dimension_numbers = #tpu.dot_dimension_numbers<[1], [0], [0], [1], [0, 0, 1, 1], [], []>} : vector<64x32xbf16>, vector<32x64xbf16>, vector<64x64xf32> -> vector<64x64xf32>
    %53 = arith.addf %47, %52 : vector<64x64xf32>
    %c2_64 = arith.constant 2 : index
    %c1_65 = arith.constant 1 : index
    %c0_66 = arith.constant 0 : index
    %54 = vector.load %arg5[%c2_64, %c1_65, %c0_66] : memref<10x16x32xbf16, #tpu.memory_space<vmem>>, vector<8x8x32xbf16>
    %55 = vector.shape_cast %54 : vector<8x8x32xbf16> to vector<64x32xbf16>
    %c7 = arith.constant 7 : index
    %c0_67 = arith.constant 0 : index
    %c0_68 = arith.constant 0 : index
    %56 = vector.load %arg2[%c7, %c0_67, %c0_68] : memref<9x32x64xbf16, #tpu.memory_space<vmem>>, vector<1x32x64xbf16>
    %57 = vector.shape_cast %56 : vector<1x32x64xbf16> to vector<32x64xbf16>
    %cst_69 = arith.constant dense<0.000000e+00> : vector<64x64xf32>
    %58 = tpu.matmul %55, %57, %cst_69 {dimension_numbers = #tpu.dot_dimension_numbers<[1], [0], [0], [1], [0, 0, 1, 1], [], []>} : vector<64x32xbf16>, vector<32x64xbf16>, vector<64x64xf32> -> vector<64x64xf32>
    %59 = arith.addf %53, %58 : vector<64x64xf32>
    %c2_70 = arith.constant 2 : index
    %c2_71 = arith.constant 2 : index
    %c0_72 = arith.constant 0 : index
    %60 = vector.load %arg5[%c2_70, %c2_71, %c0_72] : memref<10x16x32xbf16, #tpu.memory_space<vmem>>, vector<8x8x32xbf16>
    %61 = vector.shape_cast %60 : vector<8x8x32xbf16> to vector<64x32xbf16>
    %c8 = arith.constant 8 : index
    %c0_73 = arith.constant 0 : index
    %c0_74 = arith.constant 0 : index
    %62 = vector.load %arg2[%c8, %c0_73, %c0_74] : memref<9x32x64xbf16, #tpu.memory_space<vmem>>, vector<1x32x64xbf16>
    %63 = vector.shape_cast %62 : vector<1x32x64xbf16> to vector<32x64xbf16>
    %cst_75 = arith.constant dense<0.000000e+00> : vector<64x64xf32>
    %64 = tpu.matmul %61, %63, %cst_75 {dimension_numbers = #tpu.dot_dimension_numbers<[1], [0], [0], [1], [0, 0, 1, 1], [], []>} : vector<64x32xbf16>, vector<32x64xbf16>, vector<64x64xf32> -> vector<64x64xf32>
    %65 = arith.addf %59, %64 : vector<64x64xf32>
    %c0_76 = arith.constant 0 : index
    %c0_77 = arith.constant 0 : index
    %66 = vector.load %arg3[%c0_76, %c0_77] : memref<1x64xf32, #tpu.memory_space<vmem>>, vector<1x64xf32>
    %67 = vector.broadcast %66 : vector<1x64xf32> to vector<64x64xf32>
    %68 = arith.addf %65, %67 : vector<64x64xf32>
    %69 = vector.shape_cast %68 : vector<64x64xf32> to vector<1x8x8x64xf32>
    %70 = arith.truncf %69 : vector<1x8x8x64xf32> to vector<1x8x8x64xbf16>
    %c0_78 = arith.constant 0 : index
    %c0_79 = arith.constant 0 : index
    %c0_80 = arith.constant 0 : index
    %c0_81 = arith.constant 0 : index
    %71 = vector.load %arg4[%c0_78, %c0_79, %c0_80, %c0_81] : memref<1x8x8x64xbf16, #tpu.memory_space<vmem>>, vector<1x8x8x64xbf16>
    tpu.vector_store %arg4[%c0_78, %c0_79, %c0_80, %c0_81], %70 {strides = array<i32>} : memref<1x8x8x64xbf16, #tpu.memory_space<vmem>>, vector<1x8x8x64xbf16>,
    return
  }
  func.func @transform_0(%arg0: i32) -> (i32, i32, i32, i32) {
    %c0_i32 = arith.constant 0 : i32
    %c0_i32_0 = arith.constant 0 : i32
    %c0_i32_1 = arith.constant 0 : i32
    %c0_i32_2 = arith.constant 0 : i32
    return %arg0, %c0_i32, %c0_i32_0, %c0_i32_1 : i32, i32, i32, i32
  }
  func.func @transform_1(%arg0: i32) -> (i32, i32, i32) {
    %c0_i32 = arith.constant 0 : i32
    %c0_i32_0 = arith.constant 0 : i32
    %c0_i32_1 = arith.constant 0 : i32
    %c0_i32_2 = arith.constant 0 : i32
    return %c0_i32, %c0_i32_0, %c0_i32_1 : i32, i32, i32
  }
  func.func @transform_2(%arg0: i32) -> (i32, i32) {
    %c0_i32 = arith.constant 0 : i32
    %c0_i32_0 = arith.constant 0 : i32
    %c0_i32_1 = arith.constant 0 : i32
    return %c0_i32, %c0_i32_0 : i32, i32
  }
  func.func @transform_3(%arg0: i32) -> (i32, i32, i32, i32) {
    %c0_i32 = arith.constant 0 : i32
    %c0_i32_0 = arith.constant 0 : i32
    %c0_i32_1 = arith.constant 0 : i32
    %c0_i32_2 = arith.constant 0 : i32
    return %arg0, %c0_i32, %c0_i32_0, %c0_i32_1 : i32, i32, i32, i32
  }
}

</mosaic_0001>

<bundles_post_ra>
// kernel: tpu_custom_call.1
= control target key start
LH: loop header
LB: loop body
LE: loop exit
PB: predicated region body
PF: predicated region fallthrough
CT: control target
= control target key end

     0   :  { %8 = vsyncpa [#allocation4], 0  ;;  %s3705_s0 = inlined_call_operand.hbm [shape: bf16[2,8,8,32], index: 0, kind: input, shape index: {}]   ;;  %s3706_s1 = inlined_call_operand.hbm [shape: bf16[9,32,64], index: 1, kind: input, shape index: {}]   ;;  %s3707_s2 = inlined_call_operand.vmem [shape: f32[1,64], index: 2, kind: input, shape index: {}]   ;;  %s3708_s3 = inlined_call_operand.hbm [shape: bf16[2,8,8,64], index: 3, kind: output, shape index: {}]  }
   0x1   :  { %10 = vsyncpa [#allocation4 + $0x1], 0 }
   0x2   :  { %11 = vsyncpa [#allocation7], 0 }
   0x3   :  { %12 = vsyncpa [#allocation5], 0 }
   0x4   :  { %14 = vsyncpa [#allocation5 + $0x1], 0  ;;  %s3135_s12 = smov 0   ;;  %s3137_s13 = smov 0  }
   0x5   :  { %s3139_s14 = smov 0   ;;  %s3141_s15 = smov 0  }
   0x6 LB: > { %s3156_s16 = sadd.s32 4294967295, %s3105_s15   ;;  %s2312_s17 = sadd.s32 4294967294, %s3105_s15   ;;  %s3105_s15 = sphi %s3141_s15, %s3738_s15   ;;  %s3101_s14 = sphi %s3139_s14, %s3737_s14   ;;  %s3097_s13 = sphi %s3137_s13, %s3736_s13   ;;  %s3093_s12 = sphi %s3135_s12, %s3735_s12  }
   0x7   : > { %p40_p0 = scmp.ne.s32.totalorder %s3097_s13, %s3093_s12  ;;  %p3709_p1 = scmp.eq.s32.totalorder %s3156_s16, 0 }
   0x8   : > { %p112_p3 = scmp.eq.s32.totalorder %s2312_s17, 1  ;;  %p2313_p5 = scmp.ge.s32.totalorder %s3105_s15, 1 }
   0x9   : > { %p3165_p4 = por %p3709_p1, %p40_p0  ;;  %p119_p7 = scmp.lt.s32.totalorder %s3105_s15, 3 }
   0xa   : > { %p3170_p6 = por %p112_p3, %p40_p0  ;;  %s3107_s21 = smov [#allocation6]  }
   0xb   : > { %s3712_s18 = scalar_select %p3165_p4, 1, 0 }
   0xc   : > { %s3713_s19 = scalar_select %p3170_p6, 1, 0 }
   0xd   : > { %p3175_p8 = pnand %p2313_p5, %p119_p7  ;;  %s131_s22 = sshll.u32 %s3107_s21, 4  ;;  %s3179_s22 = int_to_ptr.vmem [resolvable:$true] %s131_s22 }
   0xe   : > { %s3191_s24 = sadd.s32 1, %s3105_s15   ;;  %s27_s25 = sadd.s32 1, %s3101_s14 }
   0xf   : > { %s3714_s20 = scalar_select %p3175_p8, 1, 0 }
  0x10   : > { %p2787_p9 = pneg %p3175_p8  ;;  %s24_s26 = ssub.s32 %s3105_s15, %s3191_s24 }
  0x11   : > { %s2977_s29 = scalar_lea.hbm %s3706_s1, 2304 }
  0x12   : > { %p3186_p11 = pnand %p2787_p9, %p3709_p1  ;;  %p2978_p12 = scmp.ne.s32.totalorder %s3706_s1, %s2977_s29 }
  0x13   : > { %p2984_p5 = scmp.lt.u32.totalorder %s2977_s29, %s3706_s1 }
  0x14   : > { %p2979_p13 = pneg %p3186_p11 }
  0x16   : > { %p2980_p0 = pnand %p2979_p13, %p2978_p12 }
  0x18   : > { %p2981_p3 = pneg %p2980_p0 }
  0x1a   : > { %p2986_p7 = pnand %p2984_p5, %p2981_p3 }
  0x1c   : > { %2989 = shalt.err (!%p2986_p7)
}
  0x1d   : > { %s2990_s7 = scalar_lea.vmem %s3179_s22, 2304  ;;  %p2998_p2 = scmp.lt.s32.totalorder %s3179_s22, %s3179_s22 }
  0x1e   : > { %p2991_p9 = scmp.ne.s32.totalorder %s3179_s22, %s2990_s7  ;;  %p2999_p6 = scmp.lt.s32.totalorder %s2990_s7, %s2990_s7 }
  0x20   : > { %p2993_p10 = pnand %p2991_p9, %p2979_p13  ;;  %p3000_p4 = por %p2999_p6, %p2998_p2 }
  0x22   : > { %p2994_p1 = pneg %p2993_p10 }
  0x24   : > { %p3001_p8 = pnand %p3000_p4, %p2994_p1 }
  0x26   : > { %3004 = shalt.err (!%p3001_p8)
}
  0x27   : > { %s3108_s8 = smov 64   ;;  %s3109_s9 = smov 4  }
  0x28   : > { %2790 = dma.hbm_to_vmem [thread:$0]  (!%p3186_p11), %s3706_s1, 2304, %s3179_s22, [#allocation7], %s3108_s8, %s3108_s8, %s3109_s9  }
  0x29   : > { %p25_p1 = scmp.eq.s32.totalorder %s24_s26, 0  ;;  %p34_p2 = scmp.ne.s32.totalorder %s3101_s14, %s3097_s13 }
  0x2a   : > { %p35_p4 = scmp.eq.s32.totalorder %s3105_s15, 0  ;;  %p2800_p6 = scmp.lt.s32.totalorder %s3105_s15, 2 }
  0x2b   : > { %s3225_s17 = scalar_select %p25_p1, %s3101_s14, %s27_s25  }
  0x2c   : > { %p36_p8 = por %p35_p4, %p34_p2  ;;  %p3716_p10 = scmp.eq.s32.totalorder %s3156_s16, 1 }
  0x2d   : > { %s148_s23 = sand.u32 1, %s3101_s14   ;;  %s2547_s27 = sshll.u32 %s3105_s15, 9 }
  0x2e   : > { %p3229_p12 = por %p3716_p10, %p34_p2  ;;  %s2316_s28 = sshll.u32 %s148_s23, 5 }
  0x2f   : > { %s3238_s4 = scalar_lea.hbm %s3705_s0, %s2547_s27  ;;  %s152_s22 = scalar_lea.vmem [#allocation3], %s2316_s28 }
  0x30   : > { %s159_s25 = sshll.u32 %s152_s22, 4  ;;  %p3240_p11 = pnand %p2800_p6, %p36_p8  ;;  %s3244_s25 = int_to_ptr.vmem [resolvable:$true] %s159_s25 }
  0x31   : > { %s3246_s5 = scalar_lea.sflag [#allocation4], %s148_s23  ;;  %s3005_s6 = scalar_lea.hbm %s3238_s4, 512 }
  0x32   : > { %p3006_p13 = scmp.ne.s32.totalorder %s3238_s4, %s3005_s6  ;;  %p3007_p0 = pneg %p3240_p11 }
  0x33   : > { %s3010_s11 = scalar_lea.hbm %s3705_s0, 1024  ;;  %p3011_p7 = scmp.lt.u32.totalorder %s3238_s4, %s3705_s0 }
  0x34   : > { %p3008_p3 = pnand %p3007_p0, %p3006_p13  ;;  %p3012_p9 = scmp.lt.u32.totalorder %s3010_s11, %s3005_s6 }
  0x35   : > { %p3014_p2 = scmp.lt.u32.totalorder %s3005_s6, %s3238_s4 }
  0x36   : > { %p3009_p5 = pneg %p3008_p3  ;;  %p3013_p1 = por %p3012_p9, %p3011_p7 }
  0x38   : > { %p3015_p4 = por %p3014_p2, %p3013_p1 }
  0x3a   : > { %p3016_p6 = pnand %p3015_p4, %p3009_p5 }
  0x3c   : > { %3019 = shalt.err (!%p3016_p6)
}
  0x3d   : > { %s3020_s23 = scalar_lea.vmem %s3244_s25, 512  ;;  %s3110_s29 = smov [#allocation3]  }
  0x3e   : > { %p3021_p8 = scmp.ne.s32.totalorder %s3244_s25, %s3020_s23  ;;  %s3025_s30 = sshll.u32 %s3110_s29, 4  ;;  %s3026_s30 = int_to_ptr.vmem [resolvable:$false] %s3025_s30 }
  0x3f   : > { %s3027_s22 = scalar_lea.vmem %s3026_s30, 1024  ;;  %p3028_p3 = scmp.lt.s32.totalorder %s3244_s25, %s3026_s30 }
  0x40   : > { %p3023_p10 = pnand %p3021_p8, %p3007_p0  ;;  %p3029_p7 = scmp.lt.s32.totalorder %s3027_s22, %s3020_s23 }
  0x42   : > { %p3024_p13 = pneg %p3023_p10  ;;  %p3030_p9 = por %p3029_p7, %p3028_p3 }
  0x44   : > { %p3031_p1 = pnand %p3030_p9, %p3024_p13 }
  0x46   : > { %3034 = shalt.err (!%p3031_p1)
}
  0x47   : > { %2794 = dma.hbm_to_vmem [thread:$0]  (!%p3240_p11), %s3238_s4, 512, %s3244_s25, %s3246_s5, %s3108_s8, %s3108_s8, %s3109_s9  }
  0x48   : > { %p3719_p0 = scmp.ne.s32.totalorder %s3714_s20, 0 }
  0x49   : > { %s3280_s6 = sand.u32 (!%p3719_p0), 1, %s3097_s13   ;;  %p3720_p5 = scmp.ne.s32.totalorder (!%p3719_p0), %s3712_s18, 0 }
  0x4a   : > { %171 = sbr.rel (%p3719_p0) target bundleno = 460 (0x1cc), region = 32  ;;  %s2320_s7 = sshll.u32 (!%p3719_p0), %s3280_s6, 5 }
  0x4b   : > { %s174_s10 = scalar_lea.sflag (!%p3719_p0), [#allocation4], %s3280_s6  ;;  %s3286_s26 = scalar_lea.vmem (!%p3719_p0), [#allocation3], %s2320_s7 }
  0x51   : > { %3080 = dma.done.wait (%p3720_p5), %s174_s10, 512  }
  0x52   : > { %3082 = vsyncadd (%p3720_p5), %s174_s10, 4294966784  ;;  %p3721_p11 = scmp.eq.s32.totalorder %s3156_s16, 0 }
  0x54   : > { %3084 = dma.done.wait (%p3721_p11), [#allocation7], 2304   ;;  %p3722_p2 = pmov %p3721_p11 }
  0x55   : > { %vm205_vm0 = vcmask 261120   ;;  %v3111_v0 = vmov 0   ;;  %vm209_vm1 = vcmask 253952   ;;  %vm210_vm2 = vsmask.f32 256  ;;  %v2841_v3 = vld [vmem:[#allocation6 + $0x10] sm:$0xff]  }
  0x56   : > { %3086 = vsyncadd (%p3722_p2), [#allocation7], 4294964992  ;;  %206 = vst.msk [vmem:[#allocation2] sm:$0xff] %vm205_vm0, %v3111_v0  ;;  %vm242_vm3 = vcmask 258052   ;;  %vm243_vm4 = vsmask.f32 7954  ;;  %2603 = vmatprep.subr.bf16.mxu1 %v2841_v3 }
  0x57   : > { %208 = vst.msk [vmem:[#allocation2 + $0x48] sm:$0xff] %vm205_vm0, %v3111_v0  ;;  %vm3298_vm5 = vmand %vm209_vm1, %vm210_vm2  ;;  %v2842_v4 = vld [vmem:[#allocation6 + $0x40] sm:$0xff]   ;;  %vm373_vm7 = vsmask.f32 4354  ;;  %v2843_v5 = vld [vmem:[#allocation6 + $0x18] sm:$0xff]   ;;  %2604 = vmatpush3.bf16.msra.mxu1 %v2841_v3  ;;  %vm372_vm8 = vcmask 258048  }
  0x58   : > { %vm3302_vm6 = vmand %vm242_vm3, %vm243_vm4  ;;  %2651 = vmatprep.subr.bf16.mxu0 %v2842_v4  ;;  %v2844_v6 = vld [vmem:[#allocation6 + $0x48] sm:$0xff]   ;;  %2605 = vmatprep.subr.bf16.mxu1 %v2843_v5  ;;  %v215_v8 = vld [vmem:[#allocation2 + $0x8] sm:$0x1]  ;;  %vm459_vm9 = vsmask.f32 3328  ;;  %vm837_vm13 = vcmask 1042432  }
  0x59   : > { %2652 = vmatpush3.bf16.msra.mxu0 %v2842_v4  ;;  %v216_v11 = vsel %vm3298_vm5, 0, %v215_v8  ;;  %v248_v13 = vld [vmem:[#allocation2 + $0x8] sm:$0x10]  ;;  %v3312_v14 = vld [vmem:[#allocation6] sm:$0xff]   ;;  %v3317_v17 = vld [vmem:[#allocation6 + $0x50] sm:$0xff]   ;;  %vm838_vm14 = vcmask 1046532  }
  0x5a   : > { %2653 = vmatprep.subr.bf16.mxu0 %v2844_v6  ;;  %217 = vst [vmem:[#allocation2 + $0x8] sm:$0x1] %v216_v11  ;;  %v249_v15 = vsel %vm3302_vm6, 0, %v248_v13  ;;  %v2845_v16 = vld [vmem:[%s3286_s26] ss:$0 sps:$4 sm:$0xff]   ;;  %vm3327_vm11 = vmand %vm372_vm8, %vm373_vm7  ;;  %vm2206_vm1 = vcmask 519168  }
  0x5b   : > { %2606 = vmatpush3.bf16.msra.mxu1 %v2843_v5  ;;  %250 = vst [vmem:[#allocation2 + $0x8] sm:$0x10] %v249_v15  ;;  %v218_v18 = vld [vmem:[#allocation2 + $0x10] sm:$0x1]  ;;  %v308_v19 = vshrl.u32 %v2845_v16, 16  ;;  %v311_v20 = vshll.u32 %v2845_v16, 16  ;;  %vm3407_vm15 = vmor %vm837_vm13, %vm838_vm14 }
  0x5c   : > { %2615 = vmatprep.subr.bf16.mxu1 %v3312_v14  ;;  %v219_v21 = vsel %vm3298_vm5, 0, %v218_v18  ;;  %v251_v22 = vld [vmem:[#allocation2 + $0x10] sm:$0x10]  ;;  %vm460_vm10 = vsmask.f32 7440  ;;  %s3636_s8 = scalar_lea.vmem [#allocation8], %s2320_s7 }
  0x5d   : > { %v212_v7 = vld [vmem:[#allocation2] sm:$0x1]  ;;  %v245_v9 = vld [vmem:[#allocation2] sm:$0x10]  ;;  %2654 = vmatpush3.bf16.msra.mxu0 %v2844_v6  ;;  %220 = vst [vmem:[#allocation2 + $0x10] sm:$0x1] %v219_v21  ;;  %vm3349_vm12 = vmor %vm459_vm9, %vm460_vm10 }
  0x5e   : > { %v213_v10 = vsel %vm3298_vm5, 0, %v212_v7  ;;  %v246_v12 = vsel %vm3302_vm6, 0, %v245_v9  ;;  %v252_v23 = vsel %vm3302_vm6, 0, %v251_v22  ;;  %v2851_v24 = vld [vmem:[%s3286_s26 + $0x4] ss:$0 sps:$4 sm:$0xff]   ;;  %2663 = vmatprep.subr.bf16.mxu0 %v3317_v17  ;;  %v310_v25 = vrot.slane %v308_v19, 7 }
  0x5f   : > { %214 = vst [vmem:[#allocation2] sm:$0x1] %v213_v10  ;;  %247 = vst [vmem:[#allocation2] sm:$0x10] %v246_v12  ;;  %v315_v26 = vshrl.u32 %v2851_v24, 16  ;;  %v318_v27 = vshll.u32 %v2851_v24, 16 }
  0x60   : > { %253 = vst [vmem:[#allocation2 + $0x10] sm:$0x10] %v252_v23  ;;  %v221_v28 = vld [vmem:[#allocation2 + $0x18] sm:$0x1]  ;;  %v254_v29 = vld [vmem:[#allocation2 + $0x18] sm:$0x10]  ;;  %v313_v30 = vor.u32 %v311_v20, %v310_v25 }
  0x61   : > { %v222_v32 = vsel %vm3298_vm5, 0, %v221_v28  ;;  %v255_v33 = vsel %vm3302_vm6, 0, %v254_v29  ;;  %v2857_v34 = vld [vmem:[%s3286_s26 + $0x8] ss:$0 sps:$4 sm:$0xff]   ;;  %v317_v36 = vrot.slane %v315_v26, 7  ;;  %s2548_s9 = sshll.u32 %s3156_s16, 9 }
  0x62   : > { %223 = vst [vmem:[#allocation2 + $0x18] sm:$0x1] %v222_v32  ;;  %256 = vst [vmem:[#allocation2 + $0x18] sm:$0x10] %v255_v33  ;;  %v224_v37 = vld [vmem:[#allocation2 + $0x20] sm:$0x1]  ;;  %s3653_s11 = scalar_lea.hbm %s3708_s3, %s2548_s9 }
  0x63   : > { %v375_v38 = vld [vmem:[#allocation2 + $0x8] sm:$0x1f]  ;;  %v322_v41 = vshrl.u32 %v2857_v34, 16  ;;  %v325_v42 = vshll.u32 %v2857_v34, 16  ;;  %v257_v43 = vld [vmem:[#allocation2 + $0x20] sm:$0x10]  ;;  %v320_v45 = vor.u32 %v318_v27, %v317_v36 }
  0x64   : > { %v376_v44 = vsel %vm3327_vm11, %v313_v30, %v375_v38  ;;  %v225_v46 = vsel %vm3298_vm5, 0, %v224_v37  ;;  %v258_v47 = vsel %vm3302_vm6, 0, %v257_v43  ;;  %v2862_v48 = vld [vmem:[%s3286_s26 + $0xc] ss:$0 sps:$4 sm:$0xff]   ;;  %v227_v59 = vld [vmem:[#allocation2 + $0x28] sm:$0x1] }
  0x65   : > { %377 = vst [vmem:[#allocation2 + $0x8] sm:$0x1f] %v376_v44  ;;  %v324_v52 = vrot.slane %v322_v41, 7  ;;  %226 = vst [vmem:[#allocation2 + $0x20] sm:$0x1] %v225_v46  ;;  %v329_v54 = vshrl.u32 %v2862_v48, 16 }
  0x66   : > { %v411_v35 = vld [vmem:[#allocation2] sm:$0x1f]  ;;  %259 = vst [vmem:[#allocation2 + $0x20] sm:$0x10] %v258_v47  ;;  %v332_v55 = vshll.u32 %v2862_v48, 16  ;;  %v228_v62 = vsel %vm3298_vm5, 0, %v227_v59 }
  0x67   : > { %v2331_v39 = vcombine.low %v411_v35, %v411_v35  ;;  %v2332_v40 = vcombine.high %v411_v35, %v411_v35  ;;  %v378_v53 = vld [vmem:[#allocation2 + $0x10] sm:$0x1f]  ;;  %v327_v60 = vor.u32 %v325_v42, %v324_v52  ;;  %v331_v61 = vrot.slane %v329_v54, 7  ;;  %v260_v63 = vld [vmem:[#allocation2 + $0x28] sm:$0x10]  ;;  %s2229_s4 = sshll.u32 %s3636_s8, 4  ;;  %s3655_s4 = int_to_ptr.vmem [resolvable:$true] %s2229_s4 }
  0x68   : > { %v379_v58 = vsel %vm3327_vm11, %v320_v45, %v378_v53  ;;  %229 = vst [vmem:[#allocation2 + $0x28] sm:$0x1] %v228_v62  ;;  %v261_v6 = vsel %vm3302_vm6, 0, %v260_v63  ;;  %v3356_v7 = vld [vmem:[%s3286_s26 + $0x10] ss:$0 sps:$4 sm:$0xff]   ;;  %s2216_s16 = scalar_lea.sflag [#allocation5], %s3280_s6 }
  0x69   : > { %v463_v49 = vshrl.u32 %v2331_v39, 16  ;;  %v466_v50 = vshll.u32 %v2331_v39, 16  ;;  %v472_v51 = vshll.u32 %v2332_v40, 16  ;;  %380 = vst [vmem:[#allocation2 + $0x10] sm:$0x1f] %v379_v58  ;;  %v334_v9 = vor.u32 %v332_v55, %v331_v61  ;;  %s3035_s27 = scalar_lea.vmem %s3655_s4, 512 }
  0x6a   : > { %v381_v5 = vld [vmem:[#allocation2 + $0x18] sm:$0x1f]  ;;  %262 = vst [vmem:[#allocation2 + $0x28] sm:$0x10] %v261_v6  ;;  %v230_v10 = vld [vmem:[#allocation2 + $0x30] sm:$0x1]  ;;  %p3036_p4 = scmp.ne.s32.totalorder %s3655_s4, %s3035_s27 }
  0x6b   : > { %v465_v56 = vrot.slane %v463_v49, 4  ;;  %v468_v57 = vrot.slane %v466_v50, 5  ;;  %v474_v4 = vrot.slane %v472_v51, 5  ;;  %v382_v8 = vsel %vm3327_vm11, %v327_v60, %v381_v5  ;;  %v233_v16 = vld [vmem:[#allocation2 + $0x38] sm:$0x1]  ;;  %s3112_s28 = smov [#allocation8]  }
  0x6c   : > { %383 = vst [vmem:[#allocation2 + $0x18] sm:$0x1f] %v382_v8  ;;  %v336_v12 = vshrl.u32 %v3356_v7, 16  ;;  %v339_v13 = vshll.u32 %v3356_v7, 16  ;;  %v231_v15 = vsel %vm3298_vm5, 0, %v230_v10  ;;  %v234_v28 = vsel %vm3298_vm5, 0, %v233_v16  ;;  %p3037_p6 = pnand %p3036_p4, %p3229_p12 }
  0x6d   : > { %v469_v3 = vor.u32 %v468_v57, %v465_v56  ;;  %v412_v18 = vld [vmem:[#allocation2 + $0x8] sm:$0x1f]  ;;  %v384_v20 = vld [vmem:[#allocation2 + $0x20] sm:$0x1f]  ;;  %232 = vst [vmem:[#allocation2 + $0x30] sm:$0x1] %v231_v15 }
  0x6e   : > { %v1116_v19 = vld [vmem:[#allocation2 + $0x8] sm:$0x1f]  ;;  %v2333_v21 = vcombine.low %v412_v18, %v412_v18  ;;  %v2334_v22 = vcombine.high %v412_v18, %v412_v18  ;;  %v385_v26 = vsel %vm3327_vm11, %v334_v9, %v384_v20  ;;  %v3368_v27 = vrot.slane %v336_v12, 7  ;;  %235 = vst [vmem:[#allocation2 + $0x38] sm:$0x1] %v234_v28  ;;  %p3038_p8 = pneg %p3037_p6  ;;  %s3039_s23 = sshll.u32 %s3112_s28, 4  ;;  %s3040_s23 = int_to_ptr.vmem [resolvable:$false] %s3039_s23 }
  0x6f   : > { %v470_v11 = vrot.slane %v469_v3, 4  ;;  %v2411_v24 = vcombine.low %v1116_v19, %v1116_v19  ;;  %v2412_v25 = vcombine.high %v1116_v19, %v1116_v19  ;;  %386 = vst [vmem:[#allocation2 + $0x20] sm:$0x1f] %v385_v26  ;;  %s3041_s29 = scalar_lea.vmem %s3040_s23, 1024  ;;  %p3042_p10 = scmp.lt.s32.totalorder %s3655_s4, %s3040_s23 }
  0x70   : > { %v477_v29 = vshrl.u32 %v2333_v21, 16  ;;  %v480_v30 = vshll.u32 %v2333_v21, 16  ;;  %v486_v32 = vshll.u32 %v2334_v22, 16  ;;  %v1117_v33 = vld [vmem:[#allocation2 + $0x10] sm:$0x1f]  ;;  %p3043_p13 = scmp.lt.s32.totalorder %s3041_s29, %s3035_s27 }
  0x71   : > { %v475_v23 = vsel %vm3349_vm12, %v470_v11, %v474_v4  ;;  %v1165_v34 = vshrl.u32 %v2411_v24, 16  ;;  %v2413_v35 = vcombine.low %v1117_v33, %v1117_v33  ;;  %v2414_v36 = vcombine.high %v1117_v33, %v1117_v33  ;;  %v413_v39 = vld [vmem:[#allocation2 + $0x10] sm:$0x1f] }
  0x72   : > { %v1168_v37 = vshll.u32 %v2411_v24, 16  ;;  %v1174_v38 = vshll.u32 %v2412_v25, 16  ;;  %v479_v40 = vrot.slane %v477_v29, 4  ;;  %v482_v41 = vrot.slane %v480_v30, 5  ;;  %p3044_p3 = por %p3043_p13, %p3042_p10 }
  0x73   : > { %v488_v42 = vrot.slane %v486_v32, 5  ;;  %v1167_v43 = vrot.slane %v1165_v34, 4  ;;  %v1179_v46 = vshrl.u32 %v2413_v35, 16  ;;  %v1182_v47 = vshll.u32 %v2413_v35, 16  ;;  %v414_v48 = vld [vmem:[#allocation2 + $0x18] sm:$0x1f] }
  0x74   : > { %v1170_v44 = vrot.slane %v1168_v37, 5  ;;  %v1176_v45 = vrot.slane %v1174_v38, 5  ;;  %v483_v49 = vor.u32 %v482_v41, %v479_v40  ;;  %v1188_v50 = vshll.u32 %v2414_v36, 16  ;;  %v1118_v9 = vld [vmem:[#allocation2 + $0x18] sm:$0x1f]  ;;  %p3045_p7 = pnand %p3044_p3, %p3038_p8 }
  0x75   : > { %v2335_v51 = vcombine.low %v413_v39, %v413_v39  ;;  %v2336_v52 = vcombine.high %v413_v39, %v413_v39  ;;  %v1181_v54 = vrot.slane %v1179_v46, 4  ;;  %v1184_v55 = vrot.slane %v1182_v47, 5  ;;  %v263_v36 = vld [vmem:[#allocation2 + $0x30] sm:$0x10]  ;;  %v2874_v37 = vld [vmem:[%s3286_s26 + $0x14] ss:$0 sps:$4 sm:$0xff]  }
  0x76   : > { %v1171_v53 = vor.u32 %v1170_v44, %v1167_v43  ;;  %v2337_v56 = vcombine.low %v414_v48, %v414_v48  ;;  %v484_v57 = vrot.slane %v483_v49, 4  ;;  %v1190_v58 = vrot.slane %v1188_v50, 5  ;;  %v1119_v16 = vld [vmem:[#allocation2 + $0x20] sm:$0x1f]  ;;  %v266_v44 = vld [vmem:[#allocation2 + $0x38] sm:$0x10] }
  0x77   : > { %v2338_v59 = vcombine.high %v414_v48, %v414_v48  ;;  %v491_v60 = vshrl.u32 %v2335_v51, 16  ;;  %v1185_v62 = vor.u32 %v1184_v55, %v1181_v54  ;;  %v494_v63 = vshll.u32 %v2335_v51, 16  ;;  %v415_v43 = vld [vmem:[#allocation2 + $0x20] sm:$0x1f] }
  0x78   : > { %v1172_v61 = vrot.slane %v1171_v53, 4  ;;  %v500_v3 = vshll.u32 %v2336_v52, 16  ;;  %v489_v4 = vsel %vm3349_vm12, %v484_v57, %v488_v42  ;;  %v505_v6 = vshrl.u32 %v2337_v56, 16  ;;  %v387_v42 = vld [vmem:[#allocation2 + $0x28] sm:$0x1f]  ;;  %v2873_v57 = vld [vmem:[#allocation6 + $0x8] sm:$0xff]  }
  0x79   : > { %v493_v5 = vrot.slane %v491_v60, 4  ;;  %v508_v8 = vshll.u32 %v2337_v56, 16  ;;  %v2347_v10 = vcombine.low %v475_v23, %v489_v4  ;;  %v1186_v12 = vrot.slane %v1185_v62, 4 }
  0x7a   : > { %v1177_v11 = vsel %vm3349_vm12, %v1172_v61, %v1176_v45  ;;  %v496_v15 = vrot.slane %v494_v63, 5  ;;  %v502_v18 = vrot.slane %v500_v3, 5  ;;  %v507_v19 = vrot.slane %v505_v6, 4 }
  0x7b   : > { %v510_v20 = vrot.slane %v508_v8, 5  ;;  %v514_v21 = vshll.u32 %v2338_v59, 16  ;;  %2607 = vmatprep.mubr.msk.bf16.mxu1 %vm205_vm0, %v2347_v10  ;;  %v1191_v22 = vsel %vm3349_vm12, %v1186_v12, %v1190_v58  ;;  %v2415_v25 = vcombine.low %v1118_v9, %v1118_v9  ;;  %v2875_v58 = vld [vmem:[%s3286_s26 + $0x18] ss:$0 sps:$4 sm:$0xff]   ;;  %v1392_v10 = vld [vmem:[#allocation2 + $0x18] sm:$0x1e] }
  0x7c   : > { %v497_v24 = vor.u32 %v496_v15, %v493_v5  ;;  %v2416_v26 = vcombine.high %v1118_v9, %v1118_v9  ;;  %v2427_v23 = vcombine.low %v1177_v11, %v1191_v22  ;;  %v2417_v30 = vcombine.low %v1119_v16, %v1119_v16  ;;  %v2867_v12 = vld [vmem:[#allocation6 + $0x58] sm:$0xff]   ;;  %v3401_v22 = vld [vmem:[#allocation6 + $0x20] sm:$0xff]  }
  0x7d   : > { %v511_v28 = vor.u32 %v510_v20, %v507_v19  ;;  %v516_v29 = vrot.slane %v514_v21, 5  ;;  %v2418_v33 = vcombine.high %v1119_v16, %v1119_v16  ;;  %v1193_v34 = vshrl.u32 %v2415_v25, 16 }
  0x7e   : > { %v498_v32 = vrot.slane %v497_v24, 4  ;;  %v1196_v35 = vshll.u32 %v2415_v25, 16  ;;  %2655 = vmatprep.mubr.msk.bf16.mxu0 %vm205_vm0, %v2427_v23  ;;  %v1202_v39 = vshll.u32 %v2416_v26, 16  ;;  %v1207_v40 = vshrl.u32 %v2417_v30, 16 }
  0x7f   : > { %v512_v38 = vrot.slane %v511_v28, 4  ;;  %v1210_v41 = vshll.u32 %v2417_v30, 16  ;;  %v1195_v46 = vrot.slane %v1193_v34, 4  ;;  %v1216_v48 = vshll.u32 %v2418_v33, 16  ;;  %v1393_v28 = vld [vmem:[#allocation2 + $0x20] sm:$0x1e] }
  0x80   : > { %v503_v45 = vsel %vm3349_vm12, %v498_v32, %v502_v18  ;;  %v1198_v47 = vrot.slane %v1196_v35, 5  ;;  %v1204_v50 = vrot.slane %v1202_v39, 5  ;;  %v1209_v51 = vrot.slane %v1207_v40, 4  ;;  %v2541_v40 = vld [vmem:[%s3707_s2] ss:$0 sm:$0xff] }
  0x81   : > { %v517_v49 = vsel %vm3349_vm12, %v512_v38, %v516_v29  ;;  %v1212_v52 = vrot.slane %v1210_v41, 5  ;;  %v1218_v55 = vrot.slane %v1216_v48, 5  ;;  %v341_v56 = vor.u32 %v339_v13, %v3368_v27  ;;  %v1390_v13 = vld [vmem:[#allocation2 + $0x8] sm:$0x1e]  ;;  %v1391_v27 = vld [vmem:[#allocation2 + $0x10] sm:$0x1e] }
  0x82   : > { %v2348_v53 = vcombine.low %v503_v45, %v517_v49  ;;  %v1199_v54 = vor.u32 %v1198_v47, %v1195_v46  ;;  %v2339_v60 = vcombine.low %v415_v43, %v415_v43  ;;  %v2340_v61 = vcombine.high %v415_v43, %v415_v43  ;;  %v3414_v47 = vld [vmem:[#allocation6 + $0x60] sm:$0xff]  }
  0x83   : > { %v1213_v59 = vor.u32 %v1212_v52, %v1209_v51  ;;  %v264_v62 = vsel %vm3302_vm6, 0, %v263_v36  ;;  %v388_v3 = vsel %vm3327_vm11, %v341_v56, %v387_v42  ;;  %v267_v4 = vsel %vm3302_vm6, 0, %v266_v44  ;;  %v269_v56 = vld [vmem:[#allocation2 + $0x40] sm:$0x10] }
  0x84   : > { %2608 = vmatmul.mubr.msk.bf16.vlgmr.msra.gmra.mrb[0].mxu1 %vm205_vm0, %v2348_v53  ;;  %v1200_v63 = vrot.slane %v1199_v54, 4  ;;  %265 = vst [vmem:[#allocation2 + $0x30] sm:$0x10] %v264_v62  ;;  %v343_v7 = vshrl.u32 %v2874_v37, 16  ;;  %389 = vst [vmem:[#allocation2 + $0x28] sm:$0x1f] %v388_v3  ;;  %v2437_v30 = vcombine.low %v1390_v13, %v1390_v13  ;;  %v2438_v32 = vcombine.high %v1390_v13, %v1390_v13 }
  0x85   : > { %2616 = vmatpush3.bf16.msra.mxu1 %v3312_v14  ;;  %v1214_v5 = vrot.slane %v1213_v59, 4  ;;  %v519_v6 = vshrl.u32 %v2339_v60, 16  ;;  %v522_v8 = vshll.u32 %v2339_v60, 16  ;;  %v528_v9 = vshll.u32 %v2340_v61, 16  ;;  %268 = vst [vmem:[#allocation2 + $0x38] sm:$0x10] %v267_v4 }
  0x86   : > { %v1205_v11 = vsel %vm3349_vm12, %v1200_v63, %v1204_v50  ;;  %2617 = vmatprep.subr.bf16.mxu1 %v2873_v57  ;;  %v345_v15 = vrot.slane %v343_v7, 7  ;;  %v346_v16 = vshll.u32 %v2874_v37, 16  ;;  %v350_v18 = vshrl.u32 %v2875_v58, 16  ;;  %v3427_v61 = vld [vmem:[%s3286_s26 + $0x1c] ss:$0 sps:$4 sm:$0xff]  }
  0x87   : > { %v1219_v19 = vsel %vm3349_vm12, %v1214_v5, %v1218_v55  ;;  %v521_v20 = vrot.slane %v519_v6, 4  ;;  %v524_v14 = vrot.slane %v522_v8, 5  ;;  %v530_v21 = vrot.slane %v528_v9, 5  ;;  %v236_v55 = vld [vmem:[#allocation2 + $0x40] sm:$0x1] }
  0x88   : > { %v2428_v24 = vcombine.low %v1205_v11, %v1219_v19  ;;  %v348_v25 = vor.u32 %v346_v16, %v345_v15  ;;  %v352_v26 = vrot.slane %v350_v18, 7  ;;  %v353_v23 = vshll.u32 %v2875_v58, 16  ;;  %v3432_v6 = vld [vmem:[#allocation2] sm:$0x1e]  ;;  %v3434_v8 = vld [vmem:[#allocation2 + $0x8] sm:$0x1e] }
  0x89   : > { %v525_v29 = vor.u32 %v524_v14, %v521_v20  ;;  %2618 = vmatpush3.bf16.msra.mxu1 %v2873_v57  ;;  %v2439_v33 = vcombine.low %v1391_v27, %v1391_v27  ;;  %v2440_v35 = vcombine.high %v1391_v27, %v1391_v27  ;;  %v2441_v36 = vcombine.low %v1392_v10, %v1392_v10 }
  0x8a   : > { %2656 = vmatmul.mubr.msk.bf16.vlgmr.msra.gmra.mrb[0].mxu0 %vm205_vm0, %v2428_v24  ;;  %v355_v34 = vor.u32 %v353_v23, %v352_v26  ;;  %v2442_v37 = vcombine.high %v1392_v10, %v1392_v10  ;;  %v2453_v41 = vrot.slane %v2437_v30, 9  ;;  %v1440_v42 = vrot.slane %v2438_v32, 5  ;;  %2627 = vmatprep.subr.bf16.mxu1 %v3401_v22  ;;  %v2896_v23 = vld [vmem:[#allocation6 + $0x68] sm:$0xff]  }
  0x8b   : > { %2664 = vmatpush3.bf16.msra.mxu0 %v3317_v17  ;;  %v526_v38 = vrot.slane %v525_v29, 4  ;;  %v390_v39 = vld [vmem:[#allocation2 + $0x30] sm:$0x1f]  ;;  %v2454_v43 = vrot.slane %v2439_v33, 9  ;;  %v416_v44 = vld [vmem:[#allocation2 + $0x28] sm:$0x1f]  ;;  %v2443_v48 = vcombine.low %v1393_v28, %v1393_v28  ;;  %v2444_v49 = vcombine.high %v1393_v28, %v1393_v28 }
  0x8c   : > { %2665 = vmatprep.subr.bf16.mxu0 %v2867_v12  ;;  %v391_v45 = vsel %vm3327_vm11, %v348_v25, %v390_v39  ;;  %v393_v46 = vld [vmem:[#allocation2 + $0x38] sm:$0x1f]  ;;  %v1444_v17 = vrot.slane %v2440_v35, 5  ;;  %v2341_v50 = vcombine.low %v416_v44, %v416_v44  ;;  %v2342_v51 = vcombine.high %v416_v44, %v416_v44  ;;  %v1394_v54 = vld [vmem:[#allocation2 + $0x28] sm:$0x1e] }
  0x8d   : > { %v3418_v52 = vsel %vm3349_vm12, %v526_v38, %v530_v21  ;;  %392 = vst [vmem:[#allocation2 + $0x30] sm:$0x1f] %v391_v45  ;;  %v394_v53 = vsel %vm3327_vm11, %v355_v34, %v393_v46  ;;  %v1441_v57 = vsel %vm3407_vm15, %v2453_v41, %v1440_v42  ;;  %v2455_v59 = vrot.slane %v2441_v36, 9 }
  0x8e   : > { %395 = vst [vmem:[#allocation2 + $0x38] sm:$0x1f] %v394_v53  ;;  %v1445_v58 = vsel %vm3407_vm15, %v2454_v43, %v1444_v17  ;;  %v1448_v60 = vrot.slane %v2442_v37, 5  ;;  %v533_v62 = vshrl.u32 %v2341_v50, 16  ;;  %v536_v63 = vshll.u32 %v2341_v50, 16  ;;  %v3458_v53 = vld [vmem:[#allocation6 + $0x70] sm:$0xff]  }
  0x8f   : > { %2666 = vmatpush3.bf16.msra.mxu0 %v2867_v12  ;;  %v542_v3 = vshll.u32 %v2342_v51, 16  ;;  %v2461_v4 = vcombine.low %v1441_v57, %v1445_v58  ;;  %v2456_v13 = vrot.slane %v2443_v48, 9  ;;  %v1452_v27 = vrot.slane %v2444_v49, 5 }
  0x90   : > { %2675 = vmatprep.subr.bf16.mxu0 %v3414_v47  ;;  %v1449_v7 = vsel %vm3407_vm15, %v2455_v59, %v1448_v60  ;;  %v2445_v5 = vcombine.low %v1394_v54, %v1394_v54  ;;  %v535_v9 = vrot.slane %v533_v62, 4  ;;  %v538_v10 = vrot.slane %v536_v63, 5 }
  0x91   : > { %v544_v11 = vrot.slane %v542_v3, 5  ;;  %2667 = vmatprep.mubr.msk.bf16.mxu0 %vm205_vm0, %v2461_v4  ;;  %v2446_v12 = vcombine.high %v1394_v54, %v1394_v54  ;;  %v1453_v15 = vsel %vm3407_vm15, %v2456_v13, %v1452_v27  ;;  %v237_v18 = vsel %vm3298_vm5, 0, %v236_v55  ;;  %v791_v3 = vld [vmem:[#allocation2 + $0x10] sm:$0x1e] }
  0x92   : > { %v2457_v16 = vrot.slane %v2445_v5, 9  ;;  %v270_v19 = vsel %vm3302_vm6, 0, %v269_v56  ;;  %v539_v20 = vor.u32 %v538_v10, %v535_v9  ;;  %v2462_v14 = vcombine.low %v1449_v7, %v1453_v15  ;;  %238 = vst [vmem:[#allocation2 + $0x40] sm:$0x1] %v237_v18 }
  0x93   : > { %v1456_v21 = vrot.slane %v2446_v12, 5  ;;  %271 = vst [vmem:[#allocation2 + $0x40] sm:$0x10] %v270_v19  ;;  %v357_v24 = vshrl.u32 %v3427_v61, 16  ;;  %v360_v28 = vshll.u32 %v3427_v61, 16  ;;  %v2367_v29 = vcombine.low %v3432_v6, %v3432_v6 }
  0x94   : > { %v417_v25 = vld [vmem:[#allocation2 + $0x30] sm:$0x1f]  ;;  %v2368_v30 = vcombine.high %v3432_v6, %v3432_v6  ;;  %v2369_v32 = vcombine.low %v3434_v8, %v3434_v8  ;;  %v540_v33 = vrot.slane %v539_v20, 4  ;;  %v2370_v27 = vcombine.high %v3434_v8, %v3434_v8  ;;  %v792_v12 = vld [vmem:[#allocation2 + $0x18] sm:$0x1e] }
  0x95   : > { %v1395_v26 = vld [vmem:[#allocation2 + $0x30] sm:$0x1e]  ;;  %v418_v34 = vld [vmem:[#allocation2 + $0x38] sm:$0x1f]  ;;  %v2343_v35 = vcombine.low %v417_v25, %v417_v25  ;;  %v2344_v36 = vcombine.high %v417_v25, %v417_v25  ;;  %v1457_v42 = vsel %vm3407_vm15, %v2457_v16, %v1456_v21  ;;  %v2383_v5 = vrot.slane %v2367_v29, 9 }
  0x96   : > { %v2447_v37 = vcombine.low %v1395_v26, %v1395_v26  ;;  %v2345_v38 = vcombine.low %v418_v34, %v418_v34  ;;  %v2346_v39 = vcombine.high %v418_v34, %v418_v34  ;;  %2668 = vmatmul.mubr.msk.bf16.vlgmr.msra.gmra.mrb[0].mxu0 %vm205_vm0, %v2462_v14  ;;  %v2448_v41 = vcombine.high %v1395_v26, %v1395_v26  ;;  %v1396_v43 = vld [vmem:[#allocation2 + $0x38] sm:$0x1e]  ;;  %v2889_v16 = vld [vmem:[#allocation2] ss:$8 sps:$4 sm:$0xff]   ;;  %v795_v31 = vld [vmem:[#allocation2 + $0x30] sm:$0x1e] }
  0x97   : > { %v545_v44 = vsel %vm3349_vm12, %v540_v33, %v544_v11  ;;  %v547_v45 = vshrl.u32 %v2343_v35, 16  ;;  %v550_v46 = vshll.u32 %v2343_v35, 16  ;;  %v556_v17 = vshll.u32 %v2344_v36, 16  ;;  %2676 = vmatpush3.bf16.msra.mxu0 %v3414_v47  ;;  %v239_v14 = vld [vmem:[#allocation2 + $0x48] sm:$0x1] }
  0x98   : > { %v2349_v48 = vcombine.low %v3418_v52, %v545_v44  ;;  %v561_v49 = vshrl.u32 %v2345_v38, 16  ;;  %v564_v50 = vshll.u32 %v2345_v38, 16  ;;  %v570_v51 = vshll.u32 %v2346_v39, 16  ;;  %2677 = vmatprep.subr.bf16.mxu0 %v2896_v23  ;;  %v793_v29 = vld [vmem:[#allocation2 + $0x20] sm:$0x1e] }
  0x99   : > { %v549_v54 = vrot.slane %v547_v45, 4  ;;  %v552_v55 = vrot.slane %v550_v46, 5  ;;  %v558_v56 = vrot.slane %v556_v17, 5  ;;  %v2458_v57 = vrot.slane %v2447_v37, 9  ;;  %v796_v45 = vld [vmem:[#allocation2 + $0x38] sm:$0x1e] }
  0x9a   : > { %2611 = vmatprep.mubr.msk.bf16.mxu1 %vm205_vm0, %v2349_v48  ;;  %v563_v58 = vrot.slane %v561_v49, 4  ;;  %v566_v59 = vrot.slane %v564_v50, 5  ;;  %v572_v60 = vrot.slane %v570_v51, 5  ;;  %v1460_v61 = vrot.slane %v2448_v41, 5  ;;  %v396_v13 = vld [vmem:[#allocation2 + $0x40] sm:$0x1f] }
  0x9b   : > { %v553_v62 = vor.u32 %v552_v55, %v549_v54  ;;  %v359_v47 = vrot.slane %v357_v24, 7  ;;  %v2449_v63 = vcombine.low %v1396_v43, %v1396_v43  ;;  %v2450_v52 = vcombine.high %v1396_v43, %v1396_v43  ;;  %2678 = vmatpush3.bf16.msra.mxu0 %v2896_v23  ;;  %v2891_v50 = vld [vmem:[#allocation2 + $0x10] ss:$8 sps:$4 sm:$0xff]  }
  0x9c   : > { %v567_v4 = vor.u32 %v566_v59, %v563_v58  ;;  %v1461_v7 = vsel %vm3407_vm15, %v2458_v57, %v1460_v61  ;;  %2687 = vmatprep.subr.bf16.mxu0 %v3458_v53  ;;  %v842_v19 = vrot.slane %v2368_v30, 5  ;;  %v2384_v20 = vrot.slane %v2369_v32, 9  ;;  %v794_v30 = vld [vmem:[#allocation2 + $0x28] sm:$0x1e]  ;;  %v1716_v61 = vld [vmem:[#allocation2 + $0x18] sm:$0x1f] }
  0x9d   : > { %v554_v6 = vrot.slane %v553_v62, 4  ;;  %v2463_v9 = vcombine.low %v1457_v42, %v1461_v7  ;;  %v362_v10 = vor.u32 %v360_v28, %v359_v47  ;;  %v3466_v11 = vrot.slane %v2449_v63, 9 }
  0x9e   : > { %v568_v15 = vrot.slane %v567_v4, 4  ;;  %v3468_v18 = vrot.slane %v2450_v52, 5  ;;  %v846_v24 = vrot.slane %v2370_v27, 5  ;;  %v2371_v25 = vcombine.low %v791_v3, %v791_v3 }
  0x9f   : > { %v559_v21 = vsel %vm3349_vm12, %v554_v6, %v558_v56  ;;  %2671 = vmatprep.mubr.msk.bf16.mxu0 %vm205_vm0, %v2463_v9  ;;  %v397_v8 = vsel %vm3327_vm11, %v362_v10, %v396_v13  ;;  %v843_v23 = vsel %vm3407_vm15, %v2383_v5, %v842_v19  ;;  %v2372_v28 = vcombine.high %v791_v3, %v791_v3  ;;  %v1715_v56 = vld [vmem:[#allocation2 + $0x10] sm:$0x1f]  ;;  %v2902_v13 = vld [vmem:[#allocation2 + $0x20] ss:$8 sps:$4 sm:$0xff]   ;;  %v2903_v6 = vld [vmem:[#allocation6 + $0x28] sm:$0xff]  }
  0xa0   : > { %v573_v26 = vsel %vm3349_vm12, %v568_v15, %v572_v60  ;;  %398 = vst [vmem:[#allocation2 + $0x40] sm:$0x1f] %v397_v8  ;;  %v847_v33 = vsel %vm3407_vm15, %v2384_v20, %v846_v24  ;;  %v2373_v34 = vcombine.low %v792_v12, %v792_v12  ;;  %v2374_v35 = vcombine.high %v792_v12, %v792_v12  ;;  %v1717_v24 = vld [vmem:[#allocation2 + $0x20] sm:$0x1f] }
  0xa1   : > { %v2350_v32 = vcombine.low %v559_v21, %v573_v26  ;;  %v1465_v36 = vsel %vm3407_vm15, %v3466_v11, %v3468_v18  ;;  %v2385_v37 = vrot.slane %v2371_v25, 9  ;;  %v850_v38 = vrot.slane %v2372_v28, 5  ;;  %v2905_v26 = vld [vmem:[#allocation2 + $0x10] ss:$8 sps:$4 sm:$0xff]  }
  0xa2   : > { %v240_v39 = vsel %vm3298_vm5, 0, %v239_v14  ;;  %v2386_v41 = vrot.slane %v2373_v34, 9  ;;  %v854_v42 = vrot.slane %v2374_v35, 5  ;;  %v2375_v43 = vcombine.low %v793_v29, %v793_v29 }
  0xa3   : > { %2612 = vmatmul.mubr.msk.bf16.gmra.mrb[4].mxu1 %vm205_vm0, %v2350_v32  ;;  %241 = vst [vmem:[#allocation2 + $0x48] sm:$0x1] %v240_v39  ;;  %v2376_v44 = vcombine.high %v793_v29, %v793_v29  ;;  %v3489_v46 = vcombine.low %v843_v23, %v847_v33  ;;  %v2377_v17 = vcombine.low %v794_v30, %v794_v30  ;;  %v3518_v33 = vld [vmem:[#allocation6 + $0x30] sm:$0xff]  }
  0xa4   : > { %2619 = vmatprep.mubr.msk.bf16.mxu1 %vm205_vm0, %v2889_v16  ;;  %v2378_v48 = vcombine.high %v794_v30, %v794_v30  ;;  %v2379_v49 = vcombine.low %v795_v31, %v795_v31  ;;  %v851_v1 = vsel %vm3407_vm15, %v2385_v37, %v850_v38  ;;  %v2387_v51 = vrot.slane %v2375_v43, 9  ;;  %v1718_v30 = vld [vmem:[#allocation2 + $0x28] sm:$0x1f] }
  0xa5   : > { %v858_v54 = vrot.slane %v2376_v44, 5  ;;  %v2380_v55 = vcombine.high %v795_v31, %v795_v31  ;;  %v855_v57 = vsel %vm3407_vm15, %v2386_v41, %v854_v42  ;;  %v2388_v58 = vrot.slane %v2377_v17, 9  ;;  %v2904_v41 = vld [vmem:[#allocation2 + $0x30] ss:$8 sps:$4 sm:$0xff]  }
  0xa6   : > { %v862_v59 = vrot.slane %v2378_v48, 5  ;;  %v2381_v60 = vcombine.low %v796_v45, %v796_v45  ;;  %v2382_v63 = vcombine.high %v796_v45, %v796_v45  ;;  %v3497_v52 = vrot.slane %v2379_v49, 9 }
  0xa7   : > { %v1397_v62 = vld [vmem:[#allocation2 + $0x40] sm:$0x1e]  ;;  %v859_v47 = vsel %vm3407_vm15, %v2387_v51, %v858_v54  ;;  %v3499_v3 = vrot.slane %v2380_v55, 5  ;;  %v3503_v9 = vcombine.low %v851_v1, %v855_v57  ;;  %v2481_v12 = vcombine.low %v1715_v56, %v1715_v56  ;;  %v1719_v55 = vld [vmem:[#allocation2 + $0x30] sm:$0x1f] }
  0xa8   : > { %v2451_v4 = vcombine.low %v1397_v62, %v1397_v62  ;;  %v2452_v7 = vcombine.high %v1397_v62, %v1397_v62  ;;  %v863_v27 = vsel %vm3407_vm15, %v2388_v58, %v862_v59  ;;  %v2390_v5 = vrot.slane %v2381_v60, 9  ;;  %v1720_v60 = vld [vmem:[#allocation2 + $0x38] sm:$0x1f] }
  0xa9   : > { %v3505_v10 = vcombine.low %v859_v47, %v863_v27  ;;  %v870_v11 = vrot.slane %v2382_v63, 5  ;;  %v2482_v18 = vcombine.high %v1715_v56, %v1715_v56  ;;  %v2483_v19 = vcombine.low %v1716_v61, %v1716_v61 }
  0xaa   : > { %v2460_v15 = vrot.slane %v2451_v4, 9  ;;  %v1468_v16 = vrot.slane %v2452_v7, 5  ;;  %v867_v20 = vsel %vm3407_vm15, %v3497_v52, %v3499_v3  ;;  %v2484_v14 = vcombine.high %v1716_v61, %v1716_v61  ;;  %v2907_v61 = vld [vmem:[#allocation2 + $0x20] ss:$8 sps:$4 sm:$0xff]   ;;  %v2917_v3 = vld [vmem:[#allocation2 + $0x30] ss:$8 sps:$4 sm:$0xff]  }
  0xab   : > { %2620 = vmatmul.mubr.msk.bf16.vlgmr.msra.gmra.mrb[0].mxu1 %vm205_vm0, %v2891_v50  ;;  %v1764_v21 = vshrl.u32 %v2481_v12, 16  ;;  %v1767_v8 = vshll.u32 %v2481_v12, 16  ;;  %v871_v23 = vsel %vm3407_vm15, %v2390_v5, %v870_v11  ;;  %v1773_v28 = vshll.u32 %v2482_v18, 16  ;;  %v2918_v5 = vld [vmem:[#allocation6 + $0x78] sm:$0xff]  }
  0xac   : > { %2628 = vmatpush3.bf16.msra.mxu1 %v3401_v22  ;;  %v1469_v25 = vsel %vm3407_vm15, %v2460_v15, %v1468_v16  ;;  %2623 = vmatprep.mubr.msk.bf16.mxu1 %vm205_vm0, %v2902_v13  ;;  %v1778_v29 = vshrl.u32 %v2483_v19, 16  ;;  %v1781_v31 = vshll.u32 %v2483_v19, 16  ;;  %v1787_v38 = vshll.u32 %v2484_v14, 16  ;;  %v272_v14 = vld [vmem:[#allocation2 + $0x48] sm:$0x10] }
  0xad   : > { %v2464_v32 = vcombine.low %v1465_v36, %v1469_v25  ;;  %2629 = vmatprep.subr.bf16.mxu1 %v2903_v6  ;;  %v1766_v34 = vrot.slane %v1764_v21, 4  ;;  %v1769_v35 = vrot.slane %v1767_v8, 5  ;;  %v1775_v22 = vrot.slane %v1773_v28, 5  ;;  %v1721_v25 = vld [vmem:[#allocation2 + $0x40] sm:$0x1f] }
  0xae   : > { %v1780_v37 = vrot.slane %v1778_v29, 4  ;;  %v2485_v39 = vcombine.low %v1717_v24, %v1717_v24  ;;  %v1783_v43 = vrot.slane %v1781_v31, 5  ;;  %v2486_v44 = vcombine.high %v1717_v24, %v1717_v24 }
  0xaf   : > { %2672 = vmatmul.mubr.msk.bf16.gmra.mrb[4].mxu0 %vm205_vm0, %v2464_v32  ;;  %v1770_v42 = vor.u32 %v1769_v35, %v1766_v34  ;;  %v2487_v45 = vcombine.low %v1718_v30, %v1718_v30  ;;  %v1789_v36 = vrot.slane %v1787_v38, 5  ;;  %v2488_v17 = vcombine.high %v1718_v30, %v1718_v30  ;;  %v2924_v30 = vld [vmem:[#allocation6 + $0x38] sm:$0xff]  }
  0xb0   : > { %2630 = vmatpush3.bf16.msra.mxu1 %v2903_v6  ;;  %2679 = vmatprep.mubr.msk.bf16.mxu0 %vm205_vm0, %v2905_v26  ;;  %v1792_v48 = vshrl.u32 %v2485_v39, 16  ;;  %v1795_v49 = vshll.u32 %v2485_v39, 16  ;;  %v1784_v1 = vor.u32 %v1783_v43, %v1780_v37  ;;  %v1801_v51 = vshll.u32 %v2486_v44, 16  ;;  %v3545_v37 = vld [vmem:[#allocation6 + $0x80] sm:$0xff]   ;;  %v2919_v43 = vld [vmem:[#allocation2 + $0x40] ss:$8 sps:$4 sm:$0xff]  }
  0xb1   : > { %2639 = vmatprep.subr.bf16.mxu1 %v3518_v33  ;;  %v1771_v50 = vrot.slane %v1770_v42, 4  ;;  %v1806_v54 = vshrl.u32 %v2487_v45, 16  ;;  %v1809_v58 = vshll.u32 %v2487_v45, 16  ;;  %v1815_v59 = vshll.u32 %v2488_v17, 16  ;;  %v1990_v42 = vld [vmem:[#allocation2 + $0x18] sm:$0x1e] }
  0xb2   : > { %v1794_v56 = vrot.slane %v1792_v48, 4  ;;  %v1797_v57 = vrot.slane %v1795_v49, 5  ;;  %v3524_v62 = vcombine.low %v867_v20, %v871_v23  ;;  %v1785_v63 = vrot.slane %v1784_v1, 4 }
  0xb3   : > { %2624 = vmatmul.mubr.msk.bf16.gmra.mrb[4].mxu1 %vm205_vm0, %v2904_v41  ;;  %v3528_v47 = vsel %vm3349_vm12, %v1771_v50, %v1775_v22  ;;  %v1808_v52 = vrot.slane %v1806_v54, 4  ;;  %v1803_v7 = vrot.slane %v1801_v51, 5  ;;  %v1811_v13 = vrot.slane %v1809_v58, 5  ;;  %v1989_v22 = vld [vmem:[#allocation2 + $0x10] sm:$0x1e] }
  0xb4   : > { %2631 = vmatprep.mubr.msk.bf16.mxu1 %vm205_vm0, %v3489_v46  ;;  %v1798_v4 = vor.u32 %v1797_v57, %v1794_v56  ;;  %v2489_v27 = vcombine.low %v1719_v55, %v1719_v55  ;;  %v3534_v6 = vsel %vm3349_vm12, %v1785_v63, %v1789_v36  ;;  %v2490_v11 = vcombine.high %v1719_v55, %v1719_v55  ;;  %v1991_v55 = vld [vmem:[#allocation2 + $0x20] sm:$0x1e] }
  0xb5   : > { %v2491_v12 = vcombine.low %v1720_v60, %v1720_v60  ;;  %v2492_v15 = vcombine.high %v1720_v60, %v1720_v60  ;;  %v1812_v18 = vor.u32 %v1811_v13, %v1808_v52  ;;  %v1817_v19 = vrot.slane %v1815_v59, 5  ;;  %v1992_v59 = vld [vmem:[#allocation2 + $0x28] sm:$0x1e] }
  0xb6   : > { %v1799_v16 = vrot.slane %v1798_v4, 4  ;;  %v1820_v20 = vshrl.u32 %v2489_v27, 16  ;;  %v1823_v46 = vshll.u32 %v2489_v27, 16  ;;  %v1829_v21 = vshll.u32 %v2490_v11, 16  ;;  %v1120_v13 = vld [vmem:[#allocation2 + $0x28] sm:$0x1f] }
  0xb7   : > { %2680 = vmatmul.mubr.msk.bf16.vlgmr.msra.gmra.mrb[0].mxu0 %vm205_vm0, %v2907_v61  ;;  %v1834_v8 = vshrl.u32 %v2491_v12, 16  ;;  %v1837_v24 = vshll.u32 %v2491_v12, 16  ;;  %v2497_v26 = vcombine.low %v3528_v47, %v3534_v6  ;;  %v1813_v23 = vrot.slane %v1812_v18, 4  ;;  %v2938_v61 = vld [vmem:[#allocation2 + $0x8] ss:$8 sps:$4 sm:$0xff]  }
  0xb8   : > { %2688 = vmatpush3.bf16.msra.mxu0 %v3458_v53  ;;  %2683 = vmatprep.mubr.msk.bf16.mxu0 %vm205_vm0, %v2917_v3  ;;  %v1822_v28 = vrot.slane %v1820_v20, 4  ;;  %v1843_v29 = vshll.u32 %v2492_v15, 16  ;;  %v3543_v32 = vsel %vm3349_vm12, %v1799_v16, %v1803_v7  ;;  %v1825_v34 = vrot.slane %v1823_v46, 5  ;;  %v2975_v27 = vld [vmem:[#allocation6 + $0x40] sm:$0xff]  }
  0xb9   : > { %2689 = vmatprep.subr.bf16.mxu0 %v2918_v5  ;;  %v1836_v35 = vrot.slane %v1834_v8, 4  ;;  %v1839_v31 = vrot.slane %v1837_v24, 5  ;;  %v3549_v53 = vsel %vm3349_vm12, %v1813_v23, %v1817_v19  ;;  %v1831_v38 = vrot.slane %v1829_v21, 5  ;;  %v1121_v8 = vld [vmem:[#allocation2 + $0x30] sm:$0x1f] }
  0xba   : > { %v273_v39 = vsel %vm3302_vm6, 0, %v272_v14  ;;  %v2493_v41 = vcombine.low %v1721_v25, %v1721_v25  ;;  %v1826_v44 = vor.u32 %v1825_v34, %v1822_v28  ;;  %v1845_v36 = vrot.slane %v1843_v29, 5  ;;  %v2944_v29 = vld [vmem:[#allocation6 + $0x88] sm:$0xff]  }
  0xbb   : > { %2632 = vmatmul.mubr.msk.bf16.vlgmr.msra.gmra.mrb[0].mxu1 %vm205_vm0, %v3503_v9  ;;  %v1840_v45 = vor.u32 %v1839_v31, %v1836_v35  ;;  %274 = vst [vmem:[#allocation2 + $0x48] sm:$0x10] %v273_v39  ;;  %v2494_v17 = vcombine.high %v1721_v25, %v1721_v25  ;;  %v2507_v50 = vcombine.low %v1989_v22, %v1989_v22  ;;  %v2939_v39 = vld [vmem:[#allocation2 + $0x18] ss:$8 sps:$4 sm:$0xff]  }
  0xbc   : > { %2640 = vmatpush3.bf16.msra.mxu1 %v3518_v33  ;;  %2690 = vmatpush3.bf16.msra.mxu0 %v2918_v5  ;;  %v1848_v48 = vshrl.u32 %v2493_v41, 16  ;;  %v1851_v49 = vshll.u32 %v2493_v41, 16  ;;  %v2508_v1 = vcombine.high %v1989_v22, %v1989_v22  ;;  %v1827_v2 = vrot.slane %v1826_v44, 4 }
  0xbd   : > { %2635 = vmatprep.mubr.msk.bf16.mxu1 %vm205_vm0, %v3505_v10  ;;  %2641 = vmatprep.subr.bf16.mxu1 %v2924_v30  ;;  %v1841_v51 = vrot.slane %v1840_v45, 4  ;;  %v1857_v9 = vshll.u32 %v2494_v17, 16  ;;  %v2509_v54 = vcombine.low %v1990_v42, %v1990_v42  ;;  %v2510_v58 = vcombine.high %v1990_v42, %v1990_v42 }
  0xbe   : > { %2699 = vmatprep.subr.bf16.mxu0 %v3545_v37  ;;  %v1850_v56 = vrot.slane %v1848_v48, 4  ;;  %v1853_v57 = vrot.slane %v1851_v49, 5  ;;  %v2523_v33 = vrot.slane %v2507_v50, 9  ;;  %v2498_v60 = vcombine.low %v3543_v32, %v3549_v53  ;;  %v2949_v50 = vld [vmem:[#allocation2 + $0x28] ss:$8 sps:$4 sm:$0xff]  }
  0xbf   : > { %2684 = vmatmul.mubr.msk.bf16.gmra.mrb[4].mxu0 %vm205_vm0, %v2919_v43  ;;  %v1832_v10 = vsel %vm3349_vm12, %v1827_v2, %v1831_v38  ;;  %v1846_v47 = vsel %vm3349_vm12, %v1841_v51, %v1845_v36  ;;  %v2039_v63 = vrot.slane %v2508_v1, 5  ;;  %v1859_v3 = vrot.slane %v1857_v9, 5  ;;  %v1993_v38 = vld [vmem:[#allocation2 + $0x30] sm:$0x1e]  ;;  %v1994_v51 = vld [vmem:[#allocation2 + $0x38] sm:$0x1e] }
  0xc0   : > { %2642 = vmatpush3.bf16.msra.mxu1 %v2924_v30  ;;  %2691 = vmatprep.mubr.msk.bf16.mxu0 %vm205_vm0, %v2497_v26  ;;  %v1854_v52 = vor.u32 %v1853_v57, %v1850_v56  ;;  %v2524_v4 = vrot.slane %v2509_v54, 9  ;;  %v2043_v7 = vrot.slane %v2510_v58, 5  ;;  %v2511_v6 = vcombine.low %v1991_v55, %v1991_v55  ;;  %v1122_v58 = vld [vmem:[#allocation2 + $0x38] sm:$0x1f] }
  0xc1   : > { %2711 = vmatprep.subr.bf16.mxu1 %v2975_v27  ;;  %v2040_v5 = vsel %vm3407_vm15, %v2523_v33, %v2039_v63  ;;  %v2512_v11 = vcombine.high %v1991_v55, %v1991_v55  ;;  %v2513_v12 = vcombine.low %v1992_v59, %v1992_v59  ;;  %v2499_v15 = vcombine.low %v1832_v10, %v1846_v47 }
  0xc2   : > { %v1722_v16 = vld [vmem:[#allocation2 + $0x48] sm:$0x1f]  ;;  %v1855_v18 = vrot.slane %v1854_v52, 4  ;;  %v2044_v19 = vsel %vm3407_vm15, %v2524_v4, %v2043_v7  ;;  %v2514_v20 = vcombine.high %v1992_v59, %v1992_v59  ;;  %v3573_v21 = vrot.slane %v2511_v6, 9  ;;  %v1123_v52 = vld [vmem:[#allocation2 + $0x40] sm:$0x1f] }
  0xc3   : > { %2636 = vmatmul.mubr.msk.bf16.gmra.mrb[4].mxu1 %vm205_vm0, %v3524_v62  ;;  %v2495_v14 = vcombine.low %v1722_v16, %v1722_v16  ;;  %v2496_v46 = vcombine.high %v1722_v16, %v1722_v16  ;;  %v2419_v24 = vcombine.low %v1120_v13, %v1120_v13  ;;  %v3576_v25 = vcombine.low %v2040_v5, %v2044_v19  ;;  %v2976_v4 = vld [vmem:[#allocation6 + $0x48] sm:$0xff]  }
  0xc4   : > { %2643 = vmatprep.mubr.msk.bf16.mxu1 %vm205_vm0, %v2938_v61  ;;  %v3578_v26 = vrot.slane %v2512_v11, 5  ;;  %v3580_v23 = vrot.slane %v2513_v12, 9  ;;  %v3582_v28 = vrot.slane %v2514_v20, 5  ;;  %v2420_v34 = vcombine.high %v1120_v13, %v1120_v13 }
  0xc5   : > { %v1862_v30 = vshrl.u32 %v2495_v14, 16  ;;  %v1865_v32 = vshll.u32 %v2495_v14, 16  ;;  %v1871_v62 = vshll.u32 %v2496_v46, 16  ;;  %v1860_v35 = vsel %vm3349_vm12, %v1855_v18, %v1859_v3 }
  0xc6   : > { %v2048_v31 = vsel %vm3407_vm15, %v3573_v21, %v3578_v26  ;;  %v2421_v22 = vcombine.low %v1121_v8, %v1121_v8  ;;  %v2422_v53 = vcombine.high %v1121_v8, %v1121_v8  ;;  %v2052_v44 = vsel %vm3407_vm15, %v3580_v23, %v3582_v28  ;;  %v1995_v23 = vld [vmem:[#allocation2 + $0x40] sm:$0x1e] }
  0xc7   : > { %2692 = vmatmul.mubr.msk.bf16.vlgmr.msra.gmra.mrb[0].mxu0 %vm205_vm0, %v2498_v60  ;;  %v1864_v41 = vrot.slane %v1862_v30, 4  ;;  %v1867_v42 = vrot.slane %v1865_v32, 5  ;;  %v1873_v43 = vrot.slane %v1871_v62, 5  ;;  %v1221_v45 = vshrl.u32 %v2419_v24, 16  ;;  %v1996_v62 = vld [vmem:[#allocation2 + $0x48] sm:$0x1e] }
  0xc8   : > { %2700 = vmatpush3.bf16.msra.mxu0 %v3545_v37  ;;  %2695 = vmatprep.mubr.msk.bf16.mxu0 %vm205_vm0, %v2499_v15  ;;  %v1224_v36 = vshll.u32 %v2419_v24, 16  ;;  %v1230_v17 = vshll.u32 %v2420_v34, 16  ;;  %v1235_v48 = vshrl.u32 %v2421_v22, 16  ;;  %v1238_v1 = vshll.u32 %v2421_v22, 16  ;;  %v2950_v15 = vld [vmem:[#allocation2 + $0x38] ss:$8 sps:$4 sm:$0xff]  }
  0xc9   : > { %2701 = vmatprep.subr.bf16.mxu0 %v2944_v29  ;;  %v1868_v49 = vor.u32 %v1867_v42, %v1864_v41  ;;  %v1244_v2 = vshll.u32 %v2422_v53, 16  ;;  %v2515_v9 = vcombine.low %v1993_v38, %v1993_v38  ;;  %v1223_v54 = vrot.slane %v1221_v45, 4 }
  0xca   : > { %v1226_v55 = vrot.slane %v1224_v36, 5  ;;  %v1232_v56 = vrot.slane %v1230_v17, 5  ;;  %v1237_v57 = vrot.slane %v1235_v48, 4  ;;  %v1240_v33 = vrot.slane %v1238_v1, 5 }
  0xcb   : > { %2644 = vmatmul.mubr.msk.bf16.vlgmr.msra.gmra.mrb[0].mxu1 %vm205_vm0, %v2939_v39  ;;  %v1869_v37 = vrot.slane %v1868_v49, 4  ;;  %v1246_v59 = vrot.slane %v1244_v2, 5  ;;  %v2516_v60 = vcombine.high %v1993_v38, %v1993_v38  ;;  %v2517_v10 = vcombine.low %v1994_v51, %v1994_v51 }
  0xcc   : > { %2713 = vmatpush3.bf16.msra.mxu1 %v2975_v27  ;;  %2702 = vmatpush3.bf16.msra.mxu0 %v2944_v29  ;;  %v1227_v61 = vor.u32 %v1226_v55, %v1223_v54  ;;  %v2518_v47 = vcombine.high %v1994_v51, %v1994_v51  ;;  %v2527_v63 = vrot.slane %v2515_v9, 9  ;;  %v1241_v7 = vor.u32 %v1240_v33, %v1237_v57 }
  0xcd   : > { %v1874_v3 = vsel %vm3349_vm12, %v1869_v37, %v1873_v43  ;;  %2647 = vmatprep.mubr.msk.bf16.mxu1 %vm205_vm0, %v2949_v50  ;;  %2712 = vmatprep.subr.bf16.mxu1 %v2976_v4  ;;  %v2055_v13 = vrot.slane %v2516_v60, 5  ;;  %v2423_v5 = vcombine.low %v1122_v58, %v1122_v58  ;;  %v2528_v12 = vrot.slane %v2517_v10, 9 }
  0xce   : > { %v2500_v6 = vcombine.low %v1860_v35, %v1874_v3  ;;  %v1228_v11 = vrot.slane %v1227_v61, 4  ;;  %v2059_v27 = vrot.slane %v2518_v47, 5  ;;  %v1242_v16 = vrot.slane %v1241_v7, 4 }
  0xcf   : > { %v2056_v18 = vsel %vm3407_vm15, %v2527_v63, %v2055_v13  ;;  %v2424_v19 = vcombine.high %v1122_v58, %v1122_v58  ;;  %v2425_v20 = vcombine.low %v1123_v52, %v1123_v52  ;;  %v2426_v8 = vcombine.high %v1123_v52, %v1123_v52 }
  0xd0   : > { %2696 = vmatmul.mubr.msk.bf16.gmra.mrb[4].mxu0 %vm205_vm0, %v2500_v6  ;;  %2714 = vmatpush3.bf16.msra.mxu1 %v2976_v4  ;;  %v1233_v14 = vsel %vm3349_vm12, %v1228_v11, %v1232_v56  ;;  %v2060_v46 = vsel %vm3407_vm15, %v2528_v12, %v2059_v27  ;;  %v1249_v24 = vshrl.u32 %v2423_v5, 16  ;;  %v2532_v28 = vcombine.low %v2048_v31, %v2052_v44 }
  0xd1   : > { %2703 = vmatprep.mubr.msk.bf16.mxu0 %vm205_vm0, %v3576_v25  ;;  %v1247_v29 = vsel %vm3349_vm12, %v1242_v16, %v1246_v59  ;;  %v1252_v30 = vshll.u32 %v2423_v5, 16  ;;  %v1258_v32 = vshll.u32 %v2424_v19, 16  ;;  %v1263_v22 = vshrl.u32 %v2425_v20, 16 }
  0xd2   : > { %v2429_v34 = vcombine.low %v1233_v14, %v1247_v29  ;;  %v1251_v35 = vrot.slane %v1249_v24, 4  ;;  %v1266_v53 = vshll.u32 %v2425_v20, 16  ;;  %v2533_v38 = vcombine.low %v2056_v18, %v2060_v46 }
  0xd3   : > { %2648 = vmatmul.mubr.msk.bf16.gmra.mrb[4].mxu1 %vm205_vm0, %v2950_v15  ;;  %v1254_v25 = vrot.slane %v1252_v30, 5  ;;  %v1272_v39 = vshll.u32 %v2426_v8, 16  ;;  %v2519_v41 = vcombine.low %v1995_v23, %v1995_v23  ;;  %v1265_v21 = vrot.slane %v1263_v22, 4 }
  0xd4   : > { %2659 = vmatprep.mubr.msk.bf16.mxu1 %vm205_vm0, %v2429_v34  ;;  %v1268_v26 = vrot.slane %v1266_v53, 5  ;;  %v2520_v31 = vcombine.high %v1995_v23, %v1995_v23  ;;  %v2521_v42 = vcombine.low %v1996_v62, %v1996_v62  ;;  %v1260_v44 = vrot.slane %v1258_v32, 5 }
  0xd5   : > { %v1255_v43 = vor.u32 %v1254_v25, %v1251_v35  ;;  %v2522_v45 = vcombine.high %v1996_v62, %v1996_v62  ;;  %v2529_v36 = vrot.slane %v2519_v41, 9  ;;  %v1274_v48 = vrot.slane %v1272_v39, 5 }
  0xd6   : > { %v1269_v17 = vor.u32 %v1268_v26, %v1265_v21  ;;  %v2063_v49 = vrot.slane %v2520_v31, 5  ;;  %v2530_v50 = vrot.slane %v2521_v42, 9 }
  0xd7   : > { %v1256_v1 = vrot.slane %v1255_v43, 4  ;;  %v2067_v2 = vrot.slane %v2522_v45, 5 }
  0xd8   : > { %2704 = vmatmul.mubr.msk.bf16.vlgmr.msra.gmra.mrb[0].mxu0 %vm205_vm0, %v2532_v28  ;;  %v1270_v51 = vrot.slane %v1269_v17, 4  ;;  %v2064_v54 = vsel %vm3407_vm15, %v2529_v36, %v2063_v49 }
  0xd9   : > { %2707 = vmatprep.mubr.msk.bf16.mxu0 %vm205_vm0, %v2533_v38  ;;  %v1261_v9 = vsel %vm3349_vm12, %v1256_v1, %v1260_v44  ;;  %v2068_v55 = vsel %vm3407_vm15, %v2530_v50, %v2067_v2 }
  0xda   : > { %v1275_v56 = vsel %vm3349_vm12, %v1270_v51, %v1274_v48  ;;  %v2534_v58 = vcombine.low %v2064_v54, %v2068_v55 }
  0xdb   : > { %v2430_v57 = vcombine.low %v1261_v9, %v1275_v56 }
  0xdf   : > { %2660 = vmatmul.mubr.msk.bf16.vlgmr.msra.gmra.mrb[4].mxu1 %vm205_vm0, %v2430_v57 }
  0xe0   : > { %2708 = vmatmul.mubr.msk.bf16.gmra.mrb[4].mxu0 %vm205_vm0, %v2534_v58 }
 0x19e   : > { %v2645_v37 = vpop.f32.mrb[0].mxu1 }
 0x19f   : > { %v1077_v33 = vpop.f32.mrb[1].mxu1 }
 0x1a0   : > { %v2646_v59 = vpop.f32.mrb[2].mxu1 }
 0x1a1   : > { %v1080_v60 = vpop.f32.mrb[3].mxu1 }
 0x1ab   : > { %v2705_v61 = vpop.f32.mrb[0].mxu0 }
 0x1ac   : > { %v2715_v10 = vadd.f32 %v2705_v61, %v2645_v37  ;;  %v2144_v47 = vpop.f32.mrb[1].mxu0 }
 0x1ad   : > { %v2716_v0 = vadd.f32 %v2144_v47, %v1077_v33  ;;  %v2706_v63 = vpop.f32.mrb[2].mxu0 }
 0x1ae   : > { %v2192_v52 = vadd.f32 %v2715_v10, %v2541_v40  ;;  %v2717_v3 = vadd.f32 %v2706_v63, %v2646_v59  ;;  %v2147_v4 = vpop.f32.mrb[3].mxu0 }
 0x1af   : > { %v2190_v7 = vadd.f32 %v2716_v0, %v2541_v40  ;;  %v2718_v13 = vadd.f32 %v2147_v4, %v1080_v60 }
 0x1b0   : > { %v2200_v5 = vpack.c.bf16 %v2192_v52, %v2192_v52  ;;  %v2193_v6 = vadd.f32 %v2717_v3, %v2541_v40 }
 0x1b1   : > { %v2198_v11 = vpack.c.bf16 %v2190_v7, %v2190_v7  ;;  %v2191_v12 = vadd.f32 %v2718_v13, %v2541_v40 }
 0x1b2   : > { %2209 = vst.msk [vmem:[%s3636_s8 + $0x8] sm:$0xf] %vm2206_vm1, %v2200_v5  ;;  %v2201_v27 = vpack.c.bf16 %v2193_v6, %v2193_v6  ;;  %v2661_v15 = vpop.f32.mrb[4].mxu1 }
 0x1b3   : > { %2207 = vst.msk [vmem:[%s3636_s8] sm:$0xf] %vm2206_vm1, %v2198_v11  ;;  %v2199_v16 = vpack.c.bf16 %v2191_v12, %v2191_v12  ;;  %v2709_v18 = vpop.f32.mrb[4].mxu0  ;;  %v1367_v19 = vpop.f32.mrb[5].mxu1 }
 0x1b4   : > { %2210 = vst.msk [vmem:[%s3636_s8 + $0xc] sm:$0xf] %vm2206_vm1, %v2201_v27  ;;  %v2719_v20 = vadd.f32 %v2709_v18, %v2661_v15  ;;  %v2160_v14 = vpop.f32.mrb[5].mxu0  ;;  %v2662_v46 = vpop.f32.mrb[6].mxu1 }
 0x1b5   : > { %2208 = vst.msk [vmem:[%s3636_s8 + $0x4] sm:$0xf] %vm2206_vm1, %v2199_v16  ;;  %v2720_v8 = vadd.f32 %v2160_v14, %v1367_v19  ;;  %v2710_v24 = vpop.f32.mrb[6].mxu0  ;;  %v1370_v23 = vpop.f32.mrb[7].mxu1 }
 0x1b6   : > { %v2196_v28 = vadd.f32 %v2719_v20, %v2541_v40  ;;  %v2721_v29 = vadd.f32 %v2710_v24, %v2662_v46  ;;  %v2163_v30 = vpop.f32.mrb[7].mxu0 }
 0x1b7   : > { %v2194_v32 = vadd.f32 %v2720_v8, %v2541_v40  ;;  %v2722_v62 = vadd.f32 %v2163_v30, %v1370_v23 }
 0x1b8   : > { %v2204_v34 = vpack.c.bf16 %v2196_v28, %v2196_v28  ;;  %v2197_v35 = vadd.f32 %v2721_v29, %v2541_v40 }
 0x1b9   : > { %v2202_v22 = vpack.c.bf16 %v2194_v32, %v2194_v32  ;;  %v2195_v53 = vadd.f32 %v2722_v62, %v2541_v40 }
 0x1ba   : > { %2213 = vst.msk [vmem:[%s3636_s8 + $0x18] sm:$0xf] %vm2206_vm1, %v2204_v34  ;;  %v2205_v38 = vpack.c.bf16 %v2197_v35, %v2197_v35 }
 0x1bb   : > { %2211 = vst.msk [vmem:[%s3636_s8 + $0x10] sm:$0xf] %vm2206_vm1, %v2202_v22  ;;  %v2203_v25 = vpack.c.bf16 %v2195_v53, %v2195_v53 }
 0x1bc   : > { %2214 = vst.msk [vmem:[%s3636_s8 + $0x1c] sm:$0xf] %vm2206_vm1, %v2205_v38 }
 0x1bd   : > { %2212 = vst.msk [vmem:[%s3636_s8 + $0x14] sm:$0xf] %vm2206_vm1, %v2203_v25 }
 0x1be   : > { %3048 = shalt.err (!%p3045_p7)
}
 0x1bf   : > { %s3049_s30 = scalar_lea.hbm %s3653_s11, 512  ;;  %s3053_s10 = scalar_lea.hbm %s3708_s3, 1024 }
 0x1c0   : > { %p3050_p9 = scmp.ne.s32.totalorder %s3653_s11, %s3049_s30  ;;  %p3054_p5 = scmp.lt.u32.totalorder %s3653_s11, %s3708_s3 }
 0x1c1   : > { %p3055_p11 = scmp.lt.u32.totalorder %s3053_s10, %s3049_s30  ;;  %p3057_p4 = scmp.lt.u32.totalorder %s3049_s30, %s3653_s11 }
 0x1c2   : > { %p3051_p1 = pnand %p3050_p9, %p3229_p12 }
 0x1c3   : > { %p3056_p2 = por %p3055_p11, %p3054_p5 }
 0x1c4   : > { %p3052_p0 = pneg %p3051_p1 }
 0x1c5   : > { %p3058_p6 = por %p3057_p4, %p3056_p2 }
 0x1c7   : > { %p3059_p8 = pnand %p3058_p6, %p3052_p0 }
 0x1c9   : > { %3062 = shalt.err (!%p3059_p8)
}
 0x1ca   : > { %s3113_s20 = smov 64   ;;  %s3114_s8 = smov 4  }
 0x1cb   : > { %2785 = dma.vmem_to_hbm [thread:$0]  (%p3229_p12), %s3655_s4, 512, %s3653_s11, %s2216_s16, %s3113_s20, %s3113_s20, %s3114_s8  }
 0x1cc PF: > { %s2244_s9 = sand.u32 1, %s3093_s12   ;;  %p3733_p10 = scmp.ne.s32.totalorder %s3713_s19, 0 }
 0x1cd   : > { %p3734_p13 = scmp.ge.s32.totalorder %s3105_s15, 2  ;;  %s2245_s25 = scalar_lea.sflag [#allocation5], %s2244_s9 }
 0x1cf   : > { %p2796_p3 = pnand %p3734_p13, %p3733_p10 }
 0x1d1   : > { %3088 = dma.done.wait (!%p2796_p3), %s2245_s25, 512  }
 0x1d2   : > { %3090 = vsyncadd (!%p2796_p3), %s2245_s25, 4294966784  ;;  %p17_p7 = scmp.ge.s32.totalorder %s3191_s24, 4   ;;  %s3735_s12 = smov %s3097_s13 }
 0x1d3   : > { %s3736_s13 = smov %s3101_s14  ;;  %s3737_s14 = smov %s3225_s17 }
 0x1d4   : > { %s3738_s15 = smov %s3191_s24  ;;  %19 = sbr.rel (!%p17_p7) target bundleno = 6 (0x6), region = 92 }
 0x1db   :  { %2250 = vsyncpa [#allocation4], 1 }
 0x1dc   :  { %2252 = vsyncpa [#allocation4 + $0x1], 1 }
 0x1dd   :  { %2253 = vsyncpa [#allocation7], 1 }
 0x1de   :  { %2254 = vsyncpa [#allocation5], 1 }
 0x1df   :  { %2256 = vsyncpa [#allocation5 + $0x1], 1 }

</bundles_post_ra>
